<compile_context>
chip_gen: v5e
topology: v5e:2x2
jax: 0.10.0
libtpu: 0.0.40
codegen_flags: <defaults>
</compile_context>

<pallas_src>
import jax
import jax.numpy as jnp
from jax import lax
from jax.experimental import pallas as pl
from jax.experimental.pallas import tpu as pltpu


# ----------------------------------------------------------------------------- kernel


def make_fused_lstm_kernel(num_layers, T, Bt, H):
    """Fused kernel: all LSTM layers over the sequence + final FC (one batch tile).

    Ref order (positional):
      x_ref (T*Bt, D_in)
      [wih_l, whh_l (4H or D_in rows, 4H), b_l (1, 4H)] * num_layers
      wfc (4H, OUT_pad), bfc (1, OUT_pad)
      out_ref (Bt, OUT_pad)
      scratch: xw (T*Bt, 4H) f32, seq (T*Bt, 4H), h (Bt, 4H), c (Bt, 4H) f32
    """
    G = 4 * H

    def kernel(*refs):
        x_ref = refs[0]
        layer_refs = refs[1:1 + 3 * num_layers]
        wfc_ref = refs[1 + 3 * num_layers]
        bfc_ref = refs[2 + 3 * num_layers]
        out_ref = refs[3 + 3 * num_layers]
        xw_scr, seq_scr, h_scr, c_scr = refs[4 + 3 * num_layers:]

        # Gate layout along lanes: [ i | f | g | o ], each H wide (PyTorch order).
        # sigmoid(x) = 0.5 * (1 + tanh(x/2)); the x/2 pre-scale for the i/f/o
        # lanes is already folded into the weights/bias, so the nonlinearity is
        # ONE full-vreg tanh + a hoisted-constant affine fix-up on the VPU.
        lane = lax.broadcasted_iota(jnp.int32, (Bt, G), 1)
        is_g = (lane >= 2 * H) & (lane < 3 * H)
        post_scale = jnp.where(is_g, 1.0, 0.5).astype(jnp.float32)
        post_shift = jnp.where(is_g, 0.0, 0.5).astype(jnp.float32)

        for layer in range(num_layers):
            wih = layer_refs[3 * layer][...]      # (D_in, 4H) layer 0, else (4H, 4H)
            whh = layer_refs[3 * layer + 1][...]  # (4H, 4H), rows [H,2H) real, rest 0
            b = layer_refs[3 * layer + 2][...]    # (1, 4H) f32
            last_layer = layer == num_layers - 1

            # Hoisted input projection for ALL time steps at once (one big matmul,
            # bias added once) — off the serialized critical path.
            inp = x_ref[...] if layer == 0 else seq_scr[...]
            xw_scr[...] = (
                jnp.dot(inp, wih, preferred_element_type=jnp.float32) + b)

            h_scr[...] = jnp.zeros_like(h_scr)
            c_scr[...] = jnp.zeros_like(c_scr)

            def step(t, carry):
                row = pl.multiple_of(t * Bt, Bt)
                # Recurrent matmul: full-width h against K-padded W_hh -> no lane
                # slicing and no per-step dtype cast on the MXU LHS.
                # TODO(synk): hold W_hh resident in the MXU across the time loop
                # (pltpu.matmul_push_rhs / matmul_acc_lhs) instead of re-streaming it.
                gates = xw_scr[pl.ds(row, Bt), :] + jnp.dot(
                    h_scr[...], whh, preferred_element_type=jnp.float32)
                th = jnp.tanh(gates)                 # single EUP pass for all 4 gates
                act = th * post_scale + post_shift   # [ i | f | g | o ], all in [-1,1]
                # Lane-block algebra (H-wide blocks b0..b3 = i,f,g,o):
                #   sw   = act rotated by 2H        -> [ g | o | i | f ]
                #   prod = act * sw                 -> [ ig | fo | ig | fo ] (2H-periodic)
                #   pr   = prod rotated by H        -> block1 = i*g (prod is 2H-periodic,
                #                                      so either rotate direction works)
                # Cell / hidden state live in lane block 1 ([H, 2H)); the other lane
                # blocks carry bounded junk that multiplies zero weight rows.
                sw = pltpu.roll(act, 2 * H, axis=1)
                prod = act * sw
                pr = pltpu.roll(prod, H, axis=1)
                c_new = act * c_scr[...] + pr        # block1: f*c + i*g
                h_new = sw * jnp.tanh(c_new)         # block1: o*tanh(c_new)
                c_scr[...] = c_new                   # full-vreg, unmasked stores
                h_scr[...] = h_new.astype(h_scr.dtype)
                if not last_layer:
                    # Inter-layer activations stay in VMEM scratch, full-width.
                    seq_scr[pl.ds(row, Bt), :] = h_new.astype(seq_scr.dtype)
                return carry

            # T is small & static -> fully unroll so step t's VPU/EUP work overlaps
            # step t+1's MXU push; partial unroll if T grows (vreg pressure).
            lax.fori_loop(0, T, step, 0, unroll=True if T <= 16 else 4)

        # Fused FC on the last hidden state of the top layer (lane-dense output).
        # W_fc rows [H, 2H) hold the real weights, matching h's lane-block layout.
        out_ref[...] = (
            jnp.dot(h_scr[...].astype(jnp.float32), wfc_ref[...],
                    preferred_element_type=jnp.float32)
            + bfc_ref[...]).astype(out_ref.dtype)

    return kernel


# ----------------------------------------------------------------------------- wrapper


def prepare_params(lstm_params, fc_w, fc_b, weight_dtype=jnp.float32):
    """One-time weight prep (transpose / scale / pad / cast) — out of the hot path.

      * i/f/o columns of W_ih, W_hh and the fused bias are pre-scaled by 0.5 so
        the kernel's single-tanh gate nonlinearity needs no per-step pre-scale.
      * W_hh (and W_ih of layers > 0, and W_fc) are K-padded from H to 4H rows
        with the real weights in rows [H, 2H); the kernel keeps h/c full-width,
        so junk lanes multiply zero rows.
      * weight_dtype=bfloat16 halves weight footprint and feeds the MXU bf16
        path on v5e/v6e/v7x; gate/state math stays f32 in the kernel.
    """
    H = lstm_params[0][1].shape[1]
    G = 4 * H
    col = jnp.arange(G)
    is_g_col = (col >= 2 * H) & (col < 3 * H)
    col_scale = jnp.where(is_g_col, 1.0, 0.5).astype(jnp.float32)

    layers = []
    for li, (w_ih, w_hh, b_ih, b_hh) in enumerate(lstm_params):
        wih = jnp.transpose(w_ih).astype(jnp.float32) * col_scale       # (D_l, 4H)
        whh = jnp.transpose(w_hh).astype(jnp.float32) * col_scale       # (H, 4H)
        b = ((b_ih + b_hh).astype(jnp.float32) * col_scale).reshape(1, G)
        whh_p = jnp.zeros((G, G), jnp.float32).at[H:2 * H, :].set(whh)
        if li == 0:
            wih_p = wih
        else:
            wih_p = jnp.zeros((G, G), jnp.float32).at[H:2 * H, :].set(wih)
        layers.append((wih_p.astype(weight_dtype),
                       whh_p.astype(weight_dtype),
                       b))

    out_dim = fc_w.shape[0]
    out_pad = ((out_dim + 127) // 128) * 128          # lane-dense FC output
    wfc = jnp.zeros((G, out_pad), jnp.float32)
    wfc = wfc.at[H:2 * H, :out_dim].set(jnp.transpose(fc_w).astype(jnp.float32))
    bfc = jnp.zeros((1, out_pad), jnp.float32)
    bfc = bfc.at[:, :out_dim].set(fc_b.astype(jnp.float32))
    return layers, wfc, bfc, out_dim, H


def lstm_forward(x, prepared, output_len, num_flow, batch_tile=8):
    """x: (B, T, num_flow), batch_first like the PyTorch module."""
    layers, wfc, bfc, out_dim, H = prepared
    B, T, D_in = x.shape
    num_layers = len(layers)
    act_dtype = layers[0][0].dtype
    out_pad = wfc.shape[1]
    G = 4 * H

    Bt = batch_tile                              # multiple of 8 (sublanes)
    Bp = ((B + Bt - 1) // Bt) * Bt
    n_tiles = Bp // Bt

    # time-major, batch padded, regrouped into per-batch-tile flat (T*Bt, D) slabs
    seq = jnp.transpose(x, (1, 0, 2)).astype(act_dtype)          # (T, B, D)
    if Bp != B:
        seq = jnp.pad(seq, ((0, 0), (0, Bp - B), (0, 0)))
    seq = seq.reshape(T, n_tiles, Bt, D_in).transpose(1, 0, 2, 3)
    seq = seq.reshape(n_tiles, T * Bt, D_in)

    inputs = [seq]
    for wih, whh, b in layers:
        inputs.extend((wih, whh, b))
    inputs.extend((wfc, bfc))

    def _full(a):
        return pl.BlockSpec(a.shape, lambda *_: (0,) * a.ndim)

    in_specs = [pl.BlockSpec((None, T * Bt, D_in), lambda i: (i, 0, 0))]
    in_specs += [_full(a) for a in inputs[1:]]
    out_specs = pl.BlockSpec((None, Bt, out_pad), lambda i: (i, 0, 0))

    itm = jnp.dtype(act_dtype).itemsize
    scratch = [
        pltpu.VMEM((T * Bt, G), jnp.float32),   # hoisted input projection
        pltpu.VMEM((T * Bt, G), act_dtype),     # inter-layer activations (full-width)
        pltpu.VMEM((Bt, G), act_dtype),         # h (full-width; lane block 1 is live)
        pltpu.VMEM((Bt, G), jnp.float32),       # c
    ]

    # Explicit VMEM budget (v7x has only 64 MiB physical / 32 MiB scoped default).
    vmem_need = sum(int(a.size) * a.dtype.itemsize for a in inputs)
    vmem_need += Bt * out_pad * 4
    vmem_need += T * Bt * G * (4 + itm) + Bt * G * (4 + itm)
    vmem_limit = int(min(max(4 * vmem_need, 8 << 20), 64 << 20))

    out = pl.pallas_call(
        make_fused_lstm_kernel(num_layers, T, Bt, H),
        out_shape=jax.ShapeDtypeStruct((n_tiles, Bt, out_pad), jnp.float32),
        grid=(n_tiles,),
        in_specs=in_specs,
        out_specs=out_specs,
        scratch_shapes=scratch,
        compiler_params=pltpu.CompilerParams(
            dimension_semantics=("parallel",),   # batch tiles -> both TCs on v7x
            vmem_limit_bytes=vmem_limit),
    )(*inputs)
    # TODO(synk): at large T/B/H, chunk the (T*Bt, 4H) input-projection scratch over
    # time (double-buffered DMA) instead of holding the whole sequence in VMEM.

    out = out.reshape(Bp, out_pad)[:B, :out_dim]
    return out.reshape(B, output_len, num_flow)


# ----------------------------------------------------------------------------- reference (pure JAX)


def lstm_forward_ref(x, lstm_params, fc_w, fc_b, output_len, num_flow):
    B, T, _ = x.shape
    seq = x.astype(jnp.float32)
    for (w_ih, w_hh, b_ih, b_hh) in lstm_params:
        H = w_hh.shape[1]
        h = jnp.zeros((B, H), jnp.float32)
        c = jnp.zeros((B, H), jnp.float32)
        outs = []
        for t in range(T):
            g = seq[:, t] @ w_ih.T + b_ih + h @ w_hh.T + b_hh
            i_g = jax.nn.sigmoid(g[:, :H])
            f_g = jax.nn.sigmoid(g[:, H:2 * H])
            g_g = jnp.tanh(g[:, 2 * H:3 * H])
            o_g = jax.nn.sigmoid(g[:, 3 * H:])
            c = f_g * c + i_g * g_g
            h = o_g * jnp.tanh(c)
            outs.append(h)
        seq = jnp.stack(outs, axis=1)
    out = seq[:, -1] @ fc_w.T + fc_b
    return out.reshape(B, output_len, num_flow)


# ----------------------------------------------------------------------------- main


if __name__ == "__main__":
    # Hyper-parameters implied by the module's __init__ (small, deterministic).
    num_flow = 4        # args.num_mon_flow -> in_dim
    hidden = 32         # args.hidden
    num_layers = 2      # args.layers
    output_len = 3      # args.output_len
    batch = 2
    seq_len = 8

    key = jax.random.PRNGKey(0)

    # PyTorch-style uniform(-k, k), k = 1/sqrt(hidden).
    k = 1.0 / jnp.sqrt(hidden)
    lstm_params = []
    for layer in range(num_layers):
        d_in = num_flow if layer == 0 else hidden
        key, k1, k2, k3, k4 = jax.random.split(key, 5)
        w_ih = jax.random.uniform(k1, (4 * hidden, d_in), jnp.float32, -k, k)
        w_hh = jax.random.uniform(k2, (4 * hidden, hidden), jnp.float32, -k, k)
        b_ih = jax.random.uniform(k3, (4 * hidden,), jnp.float32, -k, k)
        b_hh = jax.random.uniform(k4, (4 * hidden,), jnp.float32, -k, k)
        lstm_params.append((w_ih, w_hh, b_ih, b_hh))

    key, kw, kb, kx = jax.random.split(key, 4)
    fc_w = jax.random.uniform(kw, (num_flow * output_len, hidden), jnp.float32, -k, k)
    fc_b = jax.random.uniform(kb, (num_flow * output_len,), jnp.float32, -k, k)

    # Input: (batch, seq, num_flow), batch_first like the PyTorch module.
    x = jax.random.normal(kx, (batch, seq_len, num_flow), jnp.float32)

    ref = jax.block_until_ready(
        lstm_forward_ref(x, lstm_params, fc_w, fc_b, output_len, num_flow))

    # f32 weights: tight check against the pure-JAX reference.
    prepared_f32 = prepare_params(lstm_params, fc_w, fc_b, weight_dtype=jnp.float32)
    out = jax.block_until_ready(lstm_forward(x, prepared_f32, output_len, num_flow))
    assert out.shape == (batch, output_len, num_flow), out.shape
    err = float(jnp.max(jnp.abs(out - ref)))
    assert err < 1e-4, err

    # bf16 weights (MXU-friendly path on v5e/v6e/v7x): looser tolerance.
    prepared_bf16 = prepare_params(lstm_params, fc_w, fc_b, weight_dtype=jnp.bfloat16)
    out_bf16 = jax.block_until_ready(
        lstm_forward(x, prepared_bf16, output_len, num_flow))
    err_bf16 = float(jnp.max(jnp.abs(out_bf16 - ref)))
    assert err_bf16 < 5e-2, err_bf16

    print("KERNEL_OK")
</pallas_src>

<mosaic_0001>
module attributes {stable_mosaic.version = 11 : i64} {
  func.func @kernel(%arg0: i32, %arg1: memref<1x64x4xf32, #tpu.memory_space<vmem>>, %arg2: memref<4x128xf32, #tpu.memory_space<vmem>>, %arg3: memref<128x128xf32, #tpu.memory_space<vmem>>, %arg4: memref<1x128xf32, #tpu.memory_space<vmem>>, %arg5: memref<128x128xf32, #tpu.memory_space<vmem>>, %arg6: memref<128x128xf32, #tpu.memory_space<vmem>>, %arg7: memref<1x128xf32, #tpu.memory_space<vmem>>, %arg8: memref<128x128xf32, #tpu.memory_space<vmem>>, %arg9: memref<1x128xf32, #tpu.memory_space<vmem>>, %arg10: memref<1x8x128xf32, #tpu.memory_space<vmem>>, %arg11: memref<64x128xf32, #tpu.memory_space<vmem>>, %arg12: memref<64x128xf32, #tpu.memory_space<vmem>>, %arg13: memref<8x128xf32, #tpu.memory_space<vmem>>, %arg14: memref<8x128xf32, #tpu.memory_space<vmem>>) attributes {dimension_semantics = [#tpu.dimension_semantics<parallel>], iteration_bounds = array<i64: 1>, scalar_prefetch = 0 : i64, scratch_operands = 4 : i64, tpu.core_type = #tpu.core_type<tc>, window_params = [{transform_indices = @transform_0, window_bounds = array<i64: 1, 64, 4>}, {pipeline_mode = #tpu.pipeline_mode<synchronous>, transform_indices = @transform_1, window_bounds = array<i64: 4, 128>}, {pipeline_mode = #tpu.pipeline_mode<synchronous>, transform_indices = @transform_2, window_bounds = array<i64: 128, 128>}, {pipeline_mode = #tpu.pipeline_mode<synchronous>, transform_indices = @transform_3, window_bounds = array<i64: 1, 128>}, {pipeline_mode = #tpu.pipeline_mode<synchronous>, transform_indices = @transform_4, window_bounds = array<i64: 128, 128>}, {pipeline_mode = #tpu.pipeline_mode<synchronous>, transform_indices = @transform_5, window_bounds = array<i64: 128, 128>}, {pipeline_mode = #tpu.pipeline_mode<synchronous>, transform_indices = @transform_6, window_bounds = array<i64: 1, 128>}, {pipeline_mode = #tpu.pipeline_mode<synchronous>, transform_indices = @transform_7, window_bounds = array<i64: 128, 128>}, {pipeline_mode = #tpu.pipeline_mode<synchronous>, transform_indices = @transform_8, window_bounds = array<i64: 1, 128>}, {transform_indices = @transform_9, window_bounds = array<i64: 1, 8, 128>}]} {
    %0 = tpu.iota {dimensions = array<i32: 1>} : vector<8x128xi32>
    %c64_i32 = arith.constant 64 : i32
    %1 = vector.broadcast %c64_i32 : i32 to vector<8x128xi32>
    %2 = arith.cmpi sge, %0, %1 : vector<8x128xi32>
    %c96_i32 = arith.constant 96 : i32
    %3 = vector.broadcast %c96_i32 : i32 to vector<8x128xi32>
    %4 = arith.cmpi slt, %0, %3 : vector<8x128xi32>
    %5 = arith.andi %2, %4 : vector<8x128xi1>
    %cst = arith.constant 1.000000e+00 : f32
    %cst_0 = arith.constant 5.000000e-01 : f32
    %6 = vector.broadcast %cst : f32 to vector<8x128xf32>
    %7 = vector.broadcast %cst_0 : f32 to vector<8x128xf32>
    %8 = arith.select %5, %6, %7 : vector<8x128xi1>, vector<8x128xf32>
    %cst_1 = arith.constant 0.000000e+00 : f32
    %cst_2 = arith.constant 5.000000e-01 : f32
    %9 = vector.broadcast %cst_1 : f32 to vector<8x128xf32>
    %10 = vector.broadcast %cst_2 : f32 to vector<8x128xf32>
    %11 = arith.select %5, %9, %10 : vector<8x128xi1>, vector<8x128xf32>
    %c0 = arith.constant 0 : index
    %c0_3 = arith.constant 0 : index
    %12 = vector.load %arg2[%c0, %c0_3] : memref<4x128xf32, #tpu.memory_space<vmem>>, vector<4x128xf32>
    %c0_4 = arith.constant 0 : index
    %c0_5 = arith.constant 0 : index
    %13 = vector.load %arg3[%c0_4, %c0_5] : memref<128x128xf32, #tpu.memory_space<vmem>>, vector<128x128xf32>
    %c0_6 = arith.constant 0 : index
    %c0_7 = arith.constant 0 : index
    %14 = vector.load %arg4[%c0_6, %c0_7] : memref<1x128xf32, #tpu.memory_space<vmem>>, vector<1x128xf32>
    %c0_8 = arith.constant 0 : index
    %c0_9 = arith.constant 0 : index
    %c0_10 = arith.constant 0 : index
    %15 = vector.load %arg1[%c0_8, %c0_9, %c0_10] : memref<1x64x4xf32, #tpu.memory_space<vmem>>, vector<1x64x4xf32>
    %16 = vector.shape_cast %15 : vector<1x64x4xf32> to vector<64x4xf32>
    %cst_11 = arith.constant dense<0.000000e+00> : vector<64x128xf32>
    %17 = tpu.matmul %16, %12, %cst_11 {dimension_numbers = #tpu.dot_dimension_numbers<[1], [0], [0], [1], [0, 0, 1, 1], [], []>} : vector<64x4xf32>, vector<4x128xf32>, vector<64x128xf32> -> vector<64x128xf32>
    %18 = vector.broadcast %14 : vector<1x128xf32> to vector<64x128xf32>
    %19 = arith.addf %17, %18 : vector<64x128xf32>
    %c0_12 = arith.constant 0 : index
    %c0_13 = arith.constant 0 : index
    %20 = vector.load %arg11[%c0_12, %c0_13] : memref<64x128xf32, #tpu.memory_space<vmem>>, vector<64x128xf32>
    tpu.vector_store %arg11[%c0_12, %c0_13], %19 {strides = array<i32>} : memref<64x128xf32, #tpu.memory_space<vmem>>, vector<64x128xf32>,
    %cst_14 = arith.constant 0.000000e+00 : f32
    %21 = vector.broadcast %cst_14 : f32 to vector<8x128xf32>
    %c0_15 = arith.constant 0 : index
    %c0_16 = arith.constant 0 : index
    %22 = vector.load %arg13[%c0_15, %c0_16] : memref<8x128xf32, #tpu.memory_space<vmem>>, vector<8x128xf32>
    tpu.vector_store %arg13[%c0_15, %c0_16], %21 {strides = array<i32>} : memref<8x128xf32, #tpu.memory_space<vmem>>, vector<8x128xf32>,
    %cst_17 = arith.constant 0.000000e+00 : f32
    %23 = vector.broadcast %cst_17 : f32 to vector<8x128xf32>
    %c0_18 = arith.constant 0 : index
    %c0_19 = arith.constant 0 : index
    %24 = vector.load %arg14[%c0_18, %c0_19] : memref<8x128xf32, #tpu.memory_space<vmem>>, vector<8x128xf32>
    tpu.vector_store %arg14[%c0_18, %c0_19], %23 {strides = array<i32>} : memref<8x128xf32, #tpu.memory_space<vmem>>, vector<8x128xf32>,
    %c0_i32 = arith.constant 0 : i32
    %c8_i32 = arith.constant 8 : i32
    %25 = arith.muli %c0_i32, %c8_i32 : i32
    %26 = tpu.assume_multiple %25, 8 : i32
    %27 = arith.index_cast %26 : i32 to index
    %c0_20 = arith.constant 0 : index
    %28 = vector.load %arg11[%27, %c0_20] : memref<64x128xf32, #tpu.memory_space<vmem>>, vector<8x128xf32>
    %c0_21 = arith.constant 0 : index
    %c0_22 = arith.constant 0 : index
    %29 = vector.load %arg13[%c0_21, %c0_22] : memref<8x128xf32, #tpu.memory_space<vmem>>, vector<8x128xf32>
    %cst_23 = arith.constant dense<0.000000e+00> : vector<8x128xf32>
    %30 = tpu.matmul %29, %13, %cst_23 {dimension_numbers = #tpu.dot_dimension_numbers<[1], [0], [0], [1], [0, 0, 1, 1], [], []>} : vector<8x128xf32>, vector<128x128xf32>, vector<8x128xf32> -> vector<8x128xf32>
    %31 = arith.addf %28, %30 : vector<8x128xf32>
    %32 = math.tanh %31 : vector<8x128xf32>
    %33 = arith.mulf %32, %8 : vector<8x128xf32>
    %34 = arith.addf %33, %11 : vector<8x128xf32>
    %c64_i32_24 = arith.constant 64 : i32
    %35 = tpu.dynamic_rotate %34 by %c64_i32_24 dim 1 : vector<8x128xf32>, i32 -> vector<8x128xf32>
    %36 = arith.mulf %34, %35 : vector<8x128xf32>
    %c32_i32 = arith.constant 32 : i32
    %37 = tpu.dynamic_rotate %36 by %c32_i32 dim 1 : vector<8x128xf32>, i32 -> vector<8x128xf32>
    %c0_25 = arith.constant 0 : index
    %c0_26 = arith.constant 0 : index
    %38 = vector.load %arg14[%c0_25, %c0_26] : memref<8x128xf32, #tpu.memory_space<vmem>>, vector<8x128xf32>
    %39 = arith.mulf %34, %38 : vector<8x128xf32>
    %40 = arith.addf %39, %37 : vector<8x128xf32>
    %41 = math.tanh %40 : vector<8x128xf32>
    %42 = arith.mulf %35, %41 : vector<8x128xf32>
    %c0_27 = arith.constant 0 : index
    %c0_28 = arith.constant 0 : index
    %43 = vector.load %arg14[%c0_27, %c0_28] : memref<8x128xf32, #tpu.memory_space<vmem>>, vector<8x128xf32>
    tpu.vector_store %arg14[%c0_27, %c0_28], %40 {strides = array<i32>} : memref<8x128xf32, #tpu.memory_space<vmem>>, vector<8x128xf32>,
    %c0_29 = arith.constant 0 : index
    %c0_30 = arith.constant 0 : index
    %44 = vector.load %arg13[%c0_29, %c0_30] : memref<8x128xf32, #tpu.memory_space<vmem>>, vector<8x128xf32>
    tpu.vector_store %arg13[%c0_29, %c0_30], %42 {strides = array<i32>} : memref<8x128xf32, #tpu.memory_space<vmem>>, vector<8x128xf32>,
    %45 = arith.index_cast %26 : i32 to index
    %c0_31 = arith.constant 0 : index
    %46 = vector.load %arg12[%45, %c0_31] : memref<64x128xf32, #tpu.memory_space<vmem>>, vector<8x128xf32>
    tpu.vector_store %arg12[%45, %c0_31], %42 {strides = array<i32>} : memref<64x128xf32, #tpu.memory_space<vmem>>, vector<8x128xf32>,
    %c1_i32 = arith.constant 1 : i32
    %c8_i32_32 = arith.constant 8 : i32
    %47 = arith.muli %c1_i32, %c8_i32_32 : i32
    %48 = tpu.assume_multiple %47, 8 : i32
    %49 = arith.index_cast %48 : i32 to index
    %c0_33 = arith.constant 0 : index
    %50 = vector.load %arg11[%49, %c0_33] : memref<64x128xf32, #tpu.memory_space<vmem>>, vector<8x128xf32>
    %c0_34 = arith.constant 0 : index
    %c0_35 = arith.constant 0 : index
    %51 = vector.load %arg13[%c0_34, %c0_35] : memref<8x128xf32, #tpu.memory_space<vmem>>, vector<8x128xf32>
    %cst_36 = arith.constant dense<0.000000e+00> : vector<8x128xf32>
    %52 = tpu.matmul %51, %13, %cst_36 {dimension_numbers = #tpu.dot_dimension_numbers<[1], [0], [0], [1], [0, 0, 1, 1], [], []>} : vector<8x128xf32>, vector<128x128xf32>, vector<8x128xf32> -> vector<8x128xf32>
    %53 = arith.addf %50, %52 : vector<8x128xf32>
    %54 = math.tanh %53 : vector<8x128xf32>
    %55 = arith.mulf %54, %8 : vector<8x128xf32>
    %56 = arith.addf %55, %11 : vector<8x128xf32>
    %c64_i32_37 = arith.constant 64 : i32
    %57 = tpu.dynamic_rotate %56 by %c64_i32_37 dim 1 : vector<8x128xf32>, i32 -> vector<8x128xf32>
    %58 = arith.mulf %56, %57 : vector<8x128xf32>
    %c32_i32_38 = arith.constant 32 : i32
    %59 = tpu.dynamic_rotate %58 by %c32_i32_38 dim 1 : vector<8x128xf32>, i32 -> vector<8x128xf32>
    %c0_39 = arith.constant 0 : index
    %c0_40 = arith.constant 0 : index
    %60 = vector.load %arg14[%c0_39, %c0_40] : memref<8x128xf32, #tpu.memory_space<vmem>>, vector<8x128xf32>
    %61 = arith.mulf %56, %60 : vector<8x128xf32>
    %62 = arith.addf %61, %59 : vector<8x128xf32>
    %63 = math.tanh %62 : vector<8x128xf32>
    %64 = arith.mulf %57, %63 : vector<8x128xf32>
    %c0_41 = arith.constant 0 : index
    %c0_42 = arith.constant 0 : index
    %65 = vector.load %arg14[%c0_41, %c0_42] : memref<8x128xf32, #tpu.memory_space<vmem>>, vector<8x128xf32>
    tpu.vector_store %arg14[%c0_41, %c0_42], %62 {strides = array<i32>} : memref<8x128xf32, #tpu.memory_space<vmem>>, vector<8x128xf32>,
    %c0_43 = arith.constant 0 : index
    %c0_44 = arith.constant 0 : index
    %66 = vector.load %arg13[%c0_43, %c0_44] : memref<8x128xf32, #tpu.memory_space<vmem>>, vector<8x128xf32>
    tpu.vector_store %arg13[%c0_43, %c0_44], %64 {strides = array<i32>} : memref<8x128xf32, #tpu.memory_space<vmem>>, vector<8x128xf32>,
    %67 = arith.index_cast %48 : i32 to index
    %c0_45 = arith.constant 0 : index
    %68 = vector.load %arg12[%67, %c0_45] : memref<64x128xf32, #tpu.memory_space<vmem>>, vector<8x128xf32>
    tpu.vector_store %arg12[%67, %c0_45], %64 {strides = array<i32>} : memref<64x128xf32, #tpu.memory_space<vmem>>, vector<8x128xf32>,
    %c2_i32 = arith.constant 2 : i32
    %c8_i32_46 = arith.constant 8 : i32
    %69 = arith.muli %c2_i32, %c8_i32_46 : i32
    %70 = tpu.assume_multiple %69, 8 : i32
    %71 = arith.index_cast %70 : i32 to index
    %c0_47 = arith.constant 0 : index
    %72 = vector.load %arg11[%71, %c0_47] : memref<64x128xf32, #tpu.memory_space<vmem>>, vector<8x128xf32>
    %c0_48 = arith.constant 0 : index
    %c0_49 = arith.constant 0 : index
    %73 = vector.load %arg13[%c0_48, %c0_49] : memref<8x128xf32, #tpu.memory_space<vmem>>, vector<8x128xf32>
    %cst_50 = arith.constant dense<0.000000e+00> : vector<8x128xf32>
    %74 = tpu.matmul %73, %13, %cst_50 {dimension_numbers = #tpu.dot_dimension_numbers<[1], [0], [0], [1], [0, 0, 1, 1], [], []>} : vector<8x128xf32>, vector<128x128xf32>, vector<8x128xf32> -> vector<8x128xf32>
    %75 = arith.addf %72, %74 : vector<8x128xf32>
    %76 = math.tanh %75 : vector<8x128xf32>
    %77 = arith.mulf %76, %8 : vector<8x128xf32>
    %78 = arith.addf %77, %11 : vector<8x128xf32>
    %c64_i32_51 = arith.constant 64 : i32
    %79 = tpu.dynamic_rotate %78 by %c64_i32_51 dim 1 : vector<8x128xf32>, i32 -> vector<8x128xf32>
    %80 = arith.mulf %78, %79 : vector<8x128xf32>
    %c32_i32_52 = arith.constant 32 : i32
    %81 = tpu.dynamic_rotate %80 by %c32_i32_52 dim 1 : vector<8x128xf32>, i32 -> vector<8x128xf32>
    %c0_53 = arith.constant 0 : index
    %c0_54 = arith.constant 0 : index
    %82 = vector.load %arg14[%c0_53, %c0_54] : memref<8x128xf32, #tpu.memory_space<vmem>>, vector<8x128xf32>
    %83 = arith.mulf %78, %82 : vector<8x128xf32>
    %84 = arith.addf %83, %81 : vector<8x128xf32>
    %85 = math.tanh %84 : vector<8x128xf32>
    %86 = arith.mulf %79, %85 : vector<8x128xf32>
    %c0_55 = arith.constant 0 : index
    %c0_56 = arith.constant 0 : index
    %87 = vector.load %arg14[%c0_55, %c0_56] : memref<8x128xf32, #tpu.memory_space<vmem>>, vector<8x128xf32>
    tpu.vector_store %arg14[%c0_55, %c0_56], %84 {strides = array<i32>} : memref<8x128xf32, #tpu.memory_space<vmem>>, vector<8x128xf32>,
    %c0_57 = arith.constant 0 : index
    %c0_58 = arith.constant 0 : index
    %88 = vector.load %arg13[%c0_57, %c0_58] : memref<8x128xf32, #tpu.memory_space<vmem>>, vector<8x128xf32>
    tpu.vector_store %arg13[%c0_57, %c0_58], %86 {strides = array<i32>} : memref<8x128xf32, #tpu.memory_space<vmem>>, vector<8x128xf32>,
    %89 = arith.index_cast %70 : i32 to index
    %c0_59 = arith.constant 0 : index
    %90 = vector.load %arg12[%89, %c0_59] : memref<64x128xf32, #tpu.memory_space<vmem>>, vector<8x128xf32>
    tpu.vector_store %arg12[%89, %c0_59], %86 {strides = array<i32>} : memref<64x128xf32, #tpu.memory_space<vmem>>, vector<8x128xf32>,
    %c3_i32 = arith.constant 3 : i32
    %c8_i32_60 = arith.constant 8 : i32
    %91 = arith.muli %c3_i32, %c8_i32_60 : i32
    %92 = tpu.assume_multiple %91, 8 : i32
    %93 = arith.index_cast %92 : i32 to index
    %c0_61 = arith.constant 0 : index
    %94 = vector.load %arg11[%93, %c0_61] : memref<64x128xf32, #tpu.memory_space<vmem>>, vector<8x128xf32>
    %c0_62 = arith.constant 0 : index
    %c0_63 = arith.constant 0 : index
    %95 = vector.load %arg13[%c0_62, %c0_63] : memref<8x128xf32, #tpu.memory_space<vmem>>, vector<8x128xf32>
    %cst_64 = arith.constant dense<0.000000e+00> : vector<8x128xf32>
    %96 = tpu.matmul %95, %13, %cst_64 {dimension_numbers = #tpu.dot_dimension_numbers<[1], [0], [0], [1], [0, 0, 1, 1], [], []>} : vector<8x128xf32>, vector<128x128xf32>, vector<8x128xf32> -> vector<8x128xf32>
    %97 = arith.addf %94, %96 : vector<8x128xf32>
    %98 = math.tanh %97 : vector<8x128xf32>
    %99 = arith.mulf %98, %8 : vector<8x128xf32>
    %100 = arith.addf %99, %11 : vector<8x128xf32>
    %c64_i32_65 = arith.constant 64 : i32
    %101 = tpu.dynamic_rotate %100 by %c64_i32_65 dim 1 : vector<8x128xf32>, i32 -> vector<8x128xf32>
    %102 = arith.mulf %100, %101 : vector<8x128xf32>
    %c32_i32_66 = arith.constant 32 : i32
    %103 = tpu.dynamic_rotate %102 by %c32_i32_66 dim 1 : vector<8x128xf32>, i32 -> vector<8x128xf32>
    %c0_67 = arith.constant 0 : index
    %c0_68 = arith.constant 0 : index
    %104 = vector.load %arg14[%c0_67, %c0_68] : memref<8x128xf32, #tpu.memory_space<vmem>>, vector<8x128xf32>
    %105 = arith.mulf %100, %104 : vector<8x128xf32>
    %106 = arith.addf %105, %103 : vector<8x128xf32>
    %107 = math.tanh %106 : vector<8x128xf32>
    %108 = arith.mulf %101, %107 : vector<8x128xf32>
    %c0_69 = arith.constant 0 : index
    %c0_70 = arith.constant 0 : index
    %109 = vector.load %arg14[%c0_69, %c0_70] : memref<8x128xf32, #tpu.memory_space<vmem>>, vector<8x128xf32>
    tpu.vector_store %arg14[%c0_69, %c0_70], %106 {strides = array<i32>} : memref<8x128xf32, #tpu.memory_space<vmem>>, vector<8x128xf32>,
    %c0_71 = arith.constant 0 : index
    %c0_72 = arith.constant 0 : index
    %110 = vector.load %arg13[%c0_71, %c0_72] : memref<8x128xf32, #tpu.memory_space<vmem>>, vector<8x128xf32>
    tpu.vector_store %arg13[%c0_71, %c0_72], %108 {strides = array<i32>} : memref<8x128xf32, #tpu.memory_space<vmem>>, vector<8x128xf32>,
    %111 = arith.index_cast %92 : i32 to index
    %c0_73 = arith.constant 0 : index
    %112 = vector.load %arg12[%111, %c0_73] : memref<64x128xf32, #tpu.memory_space<vmem>>, vector<8x128xf32>
    tpu.vector_store %arg12[%111, %c0_73], %108 {strides = array<i32>} : memref<64x128xf32, #tpu.memory_space<vmem>>, vector<8x128xf32>,
    %c4_i32 = arith.constant 4 : i32
    %c8_i32_74 = arith.constant 8 : i32
    %113 = arith.muli %c4_i32, %c8_i32_74 : i32
    %114 = tpu.assume_multiple %113, 8 : i32
    %115 = arith.index_cast %114 : i32 to index
    %c0_75 = arith.constant 0 : index
    %116 = vector.load %arg11[%115, %c0_75] : memref<64x128xf32, #tpu.memory_space<vmem>>, vector<8x128xf32>
    %c0_76 = arith.constant 0 : index
    %c0_77 = arith.constant 0 : index
    %117 = vector.load %arg13[%c0_76, %c0_77] : memref<8x128xf32, #tpu.memory_space<vmem>>, vector<8x128xf32>
    %cst_78 = arith.constant dense<0.000000e+00> : vector<8x128xf32>
    %118 = tpu.matmul %117, %13, %cst_78 {dimension_numbers = #tpu.dot_dimension_numbers<[1], [0], [0], [1], [0, 0, 1, 1], [], []>} : vector<8x128xf32>, vector<128x128xf32>, vector<8x128xf32> -> vector<8x128xf32>
    %119 = arith.addf %116, %118 : vector<8x128xf32>
    %120 = math.tanh %119 : vector<8x128xf32>
    %121 = arith.mulf %120, %8 : vector<8x128xf32>
    %122 = arith.addf %121, %11 : vector<8x128xf32>
    %c64_i32_79 = arith.constant 64 : i32
    %123 = tpu.dynamic_rotate %122 by %c64_i32_79 dim 1 : vector<8x128xf32>, i32 -> vector<8x128xf32>
    %124 = arith.mulf %122, %123 : vector<8x128xf32>
    %c32_i32_80 = arith.constant 32 : i32
    %125 = tpu.dynamic_rotate %124 by %c32_i32_80 dim 1 : vector<8x128xf32>, i32 -> vector<8x128xf32>
    %c0_81 = arith.constant 0 : index
    %c0_82 = arith.constant 0 : index
    %126 = vector.load %arg14[%c0_81, %c0_82] : memref<8x128xf32, #tpu.memory_space<vmem>>, vector<8x128xf32>
    %127 = arith.mulf %122, %126 : vector<8x128xf32>
    %128 = arith.addf %127, %125 : vector<8x128xf32>
    %129 = math.tanh %128 : vector<8x128xf32>
    %130 = arith.mulf %123, %129 : vector<8x128xf32>
    %c0_83 = arith.constant 0 : index
    %c0_84 = arith.constant 0 : index
    %131 = vector.load %arg14[%c0_83, %c0_84] : memref<8x128xf32, #tpu.memory_space<vmem>>, vector<8x128xf32>
    tpu.vector_store %arg14[%c0_83, %c0_84], %128 {strides = array<i32>} : memref<8x128xf32, #tpu.memory_space<vmem>>, vector<8x128xf32>,
    %c0_85 = arith.constant 0 : index
    %c0_86 = arith.constant 0 : index
    %132 = vector.load %arg13[%c0_85, %c0_86] : memref<8x128xf32, #tpu.memory_space<vmem>>, vector<8x128xf32>
    tpu.vector_store %arg13[%c0_85, %c0_86], %130 {strides = array<i32>} : memref<8x128xf32, #tpu.memory_space<vmem>>, vector<8x128xf32>,
    %133 = arith.index_cast %114 : i32 to index
    %c0_87 = arith.constant 0 : index
    %134 = vector.load %arg12[%133, %c0_87] : memref<64x128xf32, #tpu.memory_space<vmem>>, vector<8x128xf32>
    tpu.vector_store %arg12[%133, %c0_87], %130 {strides = array<i32>} : memref<64x128xf32, #tpu.memory_space<vmem>>, vector<8x128xf32>,
    %c5_i32 = arith.constant 5 : i32
    %c8_i32_88 = arith.constant 8 : i32
    %135 = arith.muli %c5_i32, %c8_i32_88 : i32
    %136 = tpu.assume_multiple %135, 8 : i32
    %137 = arith.index_cast %136 : i32 to index
    %c0_89 = arith.constant 0 : index
    %138 = vector.load %arg11[%137, %c0_89] : memref<64x128xf32, #tpu.memory_space<vmem>>, vector<8x128xf32>
    %c0_90 = arith.constant 0 : index
    %c0_91 = arith.constant 0 : index
    %139 = vector.load %arg13[%c0_90, %c0_91] : memref<8x128xf32, #tpu.memory_space<vmem>>, vector<8x128xf32>
    %cst_92 = arith.constant dense<0.000000e+00> : vector<8x128xf32>
    %140 = tpu.matmul %139, %13, %cst_92 {dimension_numbers = #tpu.dot_dimension_numbers<[1], [0], [0], [1], [0, 0, 1, 1], [], []>} : vector<8x128xf32>, vector<128x128xf32>, vector<8x128xf32> -> vector<8x128xf32>
    %141 = arith.addf %138, %140 : vector<8x128xf32>
    %142 = math.tanh %141 : vector<8x128xf32>
    %143 = arith.mulf %142, %8 : vector<8x128xf32>
    %144 = arith.addf %143, %11 : vector<8x128xf32>
    %c64_i32_93 = arith.constant 64 : i32
    %145 = tpu.dynamic_rotate %144 by %c64_i32_93 dim 1 : vector<8x128xf32>, i32 -> vector<8x128xf32>
    %146 = arith.mulf %144, %145 : vector<8x128xf32>
    %c32_i32_94 = arith.constant 32 : i32
    %147 = tpu.dynamic_rotate %146 by %c32_i32_94 dim 1 : vector<8x128xf32>, i32 -> vector<8x128xf32>
    %c0_95 = arith.constant 0 : index
    %c0_96 = arith.constant 0 : index
    %148 = vector.load %arg14[%c0_95, %c0_96] : memref<8x128xf32, #tpu.memory_space<vmem>>, vector<8x128xf32>
    %149 = arith.mulf %144, %148 : vector<8x128xf32>
    %150 = arith.addf %149, %147 : vector<8x128xf32>
    %151 = math.tanh %150 : vector<8x128xf32>
    %152 = arith.mulf %145, %151 : vector<8x128xf32>
    %c0_97 = arith.constant 0 : index
    %c0_98 = arith.constant 0 : index
    %153 = vector.load %arg14[%c0_97, %c0_98] : memref<8x128xf32, #tpu.memory_space<vmem>>, vector<8x128xf32>
    tpu.vector_store %arg14[%c0_97, %c0_98], %150 {strides = array<i32>} : memref<8x128xf32, #tpu.memory_space<vmem>>, vector<8x128xf32>,
    %c0_99 = arith.constant 0 : index
    %c0_100 = arith.constant 0 : index
    %154 = vector.load %arg13[%c0_99, %c0_100] : memref<8x128xf32, #tpu.memory_space<vmem>>, vector<8x128xf32>
    tpu.vector_store %arg13[%c0_99, %c0_100], %152 {strides = array<i32>} : memref<8x128xf32, #tpu.memory_space<vmem>>, vector<8x128xf32>,
    %155 = arith.index_cast %136 : i32 to index
    %c0_101 = arith.constant 0 : index
    %156 = vector.load %arg12[%155, %c0_101] : memref<64x128xf32, #tpu.memory_space<vmem>>, vector<8x128xf32>
    tpu.vector_store %arg12[%155, %c0_101], %152 {strides = array<i32>} : memref<64x128xf32, #tpu.memory_space<vmem>>, vector<8x128xf32>,
    %c6_i32 = arith.constant 6 : i32
    %c8_i32_102 = arith.constant 8 : i32
    %157 = arith.muli %c6_i32, %c8_i32_102 : i32
    %158 = tpu.assume_multiple %157, 8 : i32
    %159 = arith.index_cast %158 : i32 to index
    %c0_103 = arith.constant 0 : index
    %160 = vector.load %arg11[%159, %c0_103] : memref<64x128xf32, #tpu.memory_space<vmem>>, vector<8x128xf32>
    %c0_104 = arith.constant 0 : index
    %c0_105 = arith.constant 0 : index
    %161 = vector.load %arg13[%c0_104, %c0_105] : memref<8x128xf32, #tpu.memory_space<vmem>>, vector<8x128xf32>
    %cst_106 = arith.constant dense<0.000000e+00> : vector<8x128xf32>
    %162 = tpu.matmul %161, %13, %cst_106 {dimension_numbers = #tpu.dot_dimension_numbers<[1], [0], [0], [1], [0, 0, 1, 1], [], []>} : vector<8x128xf32>, vector<128x128xf32>, vector<8x128xf32> -> vector<8x128xf32>
    %163 = arith.addf %160, %162 : vector<8x128xf32>
    %164 = math.tanh %163 : vector<8x128xf32>
    %165 = arith.mulf %164, %8 : vector<8x128xf32>
    %166 = arith.addf %165, %11 : vector<8x128xf32>
    %c64_i32_107 = arith.constant 64 : i32
    %167 = tpu.dynamic_rotate %166 by %c64_i32_107 dim 1 : vector<8x128xf32>, i32 -> vector<8x128xf32>
    %168 = arith.mulf %166, %167 : vector<8x128xf32>
    %c32_i32_108 = arith.constant 32 : i32
    %169 = tpu.dynamic_rotate %168 by %c32_i32_108 dim 1 : vector<8x128xf32>, i32 -> vector<8x128xf32>
    %c0_109 = arith.constant 0 : index
    %c0_110 = arith.constant 0 : index
    %170 = vector.load %arg14[%c0_109, %c0_110] : memref<8x128xf32, #tpu.memory_space<vmem>>, vector<8x128xf32>
    %171 = arith.mulf %166, %170 : vector<8x128xf32>
    %172 = arith.addf %171, %169 : vector<8x128xf32>
    %173 = math.tanh %172 : vector<8x128xf32>
    %174 = arith.mulf %167, %173 : vector<8x128xf32>
    %c0_111 = arith.constant 0 : index
    %c0_112 = arith.constant 0 : index
    %175 = vector.load %arg14[%c0_111, %c0_112] : memref<8x128xf32, #tpu.memory_space<vmem>>, vector<8x128xf32>
    tpu.vector_store %arg14[%c0_111, %c0_112], %172 {strides = array<i32>} : memref<8x128xf32, #tpu.memory_space<vmem>>, vector<8x128xf32>,
    %c0_113 = arith.constant 0 : index
    %c0_114 = arith.constant 0 : index
    %176 = vector.load %arg13[%c0_113, %c0_114] : memref<8x128xf32, #tpu.memory_space<vmem>>, vector<8x128xf32>
    tpu.vector_store %arg13[%c0_113, %c0_114], %174 {strides = array<i32>} : memref<8x128xf32, #tpu.memory_space<vmem>>, vector<8x128xf32>,
    %177 = arith.index_cast %158 : i32 to index
    %c0_115 = arith.constant 0 : index
    %178 = vector.load %arg12[%177, %c0_115] : memref<64x128xf32, #tpu.memory_space<vmem>>, vector<8x128xf32>
    tpu.vector_store %arg12[%177, %c0_115], %174 {strides = array<i32>} : memref<64x128xf32, #tpu.memory_space<vmem>>, vector<8x128xf32>,
    %c7_i32 = arith.constant 7 : i32
    %c8_i32_116 = arith.constant 8 : i32
    %179 = arith.muli %c7_i32, %c8_i32_116 : i32
    %180 = tpu.assume_multiple %179, 8 : i32
    %181 = arith.index_cast %180 : i32 to index
    %c0_117 = arith.constant 0 : index
    %182 = vector.load %arg11[%181, %c0_117] : memref<64x128xf32, #tpu.memory_space<vmem>>, vector<8x128xf32>
    %c0_118 = arith.constant 0 : index
    %c0_119 = arith.constant 0 : index
    %183 = vector.load %arg13[%c0_118, %c0_119] : memref<8x128xf32, #tpu.memory_space<vmem>>, vector<8x128xf32>
    %cst_120 = arith.constant dense<0.000000e+00> : vector<8x128xf32>
    %184 = tpu.matmul %183, %13, %cst_120 {dimension_numbers = #tpu.dot_dimension_numbers<[1], [0], [0], [1], [0, 0, 1, 1], [], []>} : vector<8x128xf32>, vector<128x128xf32>, vector<8x128xf32> -> vector<8x128xf32>
    %185 = arith.addf %182, %184 : vector<8x128xf32>
    %186 = math.tanh %185 : vector<8x128xf32>
    %187 = arith.mulf %186, %8 : vector<8x128xf32>
    %188 = arith.addf %187, %11 : vector<8x128xf32>
    %c64_i32_121 = arith.constant 64 : i32
    %189 = tpu.dynamic_rotate %188 by %c64_i32_121 dim 1 : vector<8x128xf32>, i32 -> vector<8x128xf32>
    %190 = arith.mulf %188, %189 : vector<8x128xf32>
    %c32_i32_122 = arith.constant 32 : i32
    %191 = tpu.dynamic_rotate %190 by %c32_i32_122 dim 1 : vector<8x128xf32>, i32 -> vector<8x128xf32>
    %c0_123 = arith.constant 0 : index
    %c0_124 = arith.constant 0 : index
    %192 = vector.load %arg14[%c0_123, %c0_124] : memref<8x128xf32, #tpu.memory_space<vmem>>, vector<8x128xf32>
    %193 = arith.mulf %188, %192 : vector<8x128xf32>
    %194 = arith.addf %193, %191 : vector<8x128xf32>
    %195 = math.tanh %194 : vector<8x128xf32>
    %196 = arith.mulf %189, %195 : vector<8x128xf32>
    %c0_125 = arith.constant 0 : index
    %c0_126 = arith.constant 0 : index
    %197 = vector.load %arg14[%c0_125, %c0_126] : memref<8x128xf32, #tpu.memory_space<vmem>>, vector<8x128xf32>
    tpu.vector_store %arg14[%c0_125, %c0_126], %194 {strides = array<i32>} : memref<8x128xf32, #tpu.memory_space<vmem>>, vector<8x128xf32>,
    %c0_127 = arith.constant 0 : index
    %c0_128 = arith.constant 0 : index
    %198 = vector.load %arg13[%c0_127, %c0_128] : memref<8x128xf32, #tpu.memory_space<vmem>>, vector<8x128xf32>
    tpu.vector_store %arg13[%c0_127, %c0_128], %196 {strides = array<i32>} : memref<8x128xf32, #tpu.memory_space<vmem>>, vector<8x128xf32>,
    %199 = arith.index_cast %180 : i32 to index
    %c0_129 = arith.constant 0 : index
    %200 = vector.load %arg12[%199, %c0_129] : memref<64x128xf32, #tpu.memory_space<vmem>>, vector<8x128xf32>
    tpu.vector_store %arg12[%199, %c0_129], %196 {strides = array<i32>} : memref<64x128xf32, #tpu.memory_space<vmem>>, vector<8x128xf32>,
    %c8_i32_130 = arith.constant 8 : i32
    %c0_131 = arith.constant 0 : index
    %c0_132 = arith.constant 0 : index
    %201 = vector.load %arg5[%c0_131, %c0_132] : memref<128x128xf32, #tpu.memory_space<vmem>>, vector<128x128xf32>
    %c0_133 = arith.constant 0 : index
    %c0_134 = arith.constant 0 : index
    %202 = vector.load %arg6[%c0_133, %c0_134] : memref<128x128xf32, #tpu.memory_space<vmem>>, vector<128x128xf32>
    %c0_135 = arith.constant 0 : index
    %c0_136 = arith.constant 0 : index
    %203 = vector.load %arg7[%c0_135, %c0_136] : memref<1x128xf32, #tpu.memory_space<vmem>>, vector<1x128xf32>
    %c0_137 = arith.constant 0 : index
    %c0_138 = arith.constant 0 : index
    %204 = vector.load %arg12[%c0_137, %c0_138] : memref<64x128xf32, #tpu.memory_space<vmem>>, vector<64x128xf32>
    %cst_139 = arith.constant dense<0.000000e+00> : vector<64x128xf32>
    %205 = tpu.matmul %204, %201, %cst_139 {dimension_numbers = #tpu.dot_dimension_numbers<[1], [0], [0], [1], [0, 0, 1, 1], [], []>} : vector<64x128xf32>, vector<128x128xf32>, vector<64x128xf32> -> vector<64x128xf32>
    %206 = vector.broadcast %203 : vector<1x128xf32> to vector<64x128xf32>
    %207 = arith.addf %205, %206 : vector<64x128xf32>
    %c0_140 = arith.constant 0 : index
    %c0_141 = arith.constant 0 : index
    %208 = vector.load %arg11[%c0_140, %c0_141] : memref<64x128xf32, #tpu.memory_space<vmem>>, vector<64x128xf32>
    tpu.vector_store %arg11[%c0_140, %c0_141], %207 {strides = array<i32>} : memref<64x128xf32, #tpu.memory_space<vmem>>, vector<64x128xf32>,
    %cst_142 = arith.constant 0.000000e+00 : f32
    %209 = vector.broadcast %cst_142 : f32 to vector<8x128xf32>
    %c0_143 = arith.constant 0 : index
    %c0_144 = arith.constant 0 : index
    %210 = vector.load %arg13[%c0_143, %c0_144] : memref<8x128xf32, #tpu.memory_space<vmem>>, vector<8x128xf32>
    tpu.vector_store %arg13[%c0_143, %c0_144], %209 {strides = array<i32>} : memref<8x128xf32, #tpu.memory_space<vmem>>, vector<8x128xf32>,
    %cst_145 = arith.constant 0.000000e+00 : f32
    %211 = vector.broadcast %cst_145 : f32 to vector<8x128xf32>
    %c0_146 = arith.constant 0 : index
    %c0_147 = arith.constant 0 : index
    %212 = vector.load %arg14[%c0_146, %c0_147] : memref<8x128xf32, #tpu.memory_space<vmem>>, vector<8x128xf32>
    tpu.vector_store %arg14[%c0_146, %c0_147], %211 {strides = array<i32>} : memref<8x128xf32, #tpu.memory_space<vmem>>, vector<8x128xf32>,
    %c0_i32_148 = arith.constant 0 : i32
    %c8_i32_149 = arith.constant 8 : i32
    %213 = arith.muli %c0_i32_148, %c8_i32_149 : i32
    %214 = tpu.assume_multiple %213, 8 : i32
    %215 = arith.index_cast %214 : i32 to index
    %c0_150 = arith.constant 0 : index
    %216 = vector.load %arg11[%215, %c0_150] : memref<64x128xf32, #tpu.memory_space<vmem>>, vector<8x128xf32>
    %c0_151 = arith.constant 0 : index
    %c0_152 = arith.constant 0 : index
    %217 = vector.load %arg13[%c0_151, %c0_152] : memref<8x128xf32, #tpu.memory_space<vmem>>, vector<8x128xf32>
    %cst_153 = arith.constant dense<0.000000e+00> : vector<8x128xf32>
    %218 = tpu.matmul %217, %202, %cst_153 {dimension_numbers = #tpu.dot_dimension_numbers<[1], [0], [0], [1], [0, 0, 1, 1], [], []>} : vector<8x128xf32>, vector<128x128xf32>, vector<8x128xf32> -> vector<8x128xf32>
    %219 = arith.addf %216, %218 : vector<8x128xf32>
    %220 = math.tanh %219 : vector<8x128xf32>
    %221 = arith.mulf %220, %8 : vector<8x128xf32>
    %222 = arith.addf %221, %11 : vector<8x128xf32>
    %c64_i32_154 = arith.constant 64 : i32
    %223 = tpu.dynamic_rotate %222 by %c64_i32_154 dim 1 : vector<8x128xf32>, i32 -> vector<8x128xf32>
    %224 = arith.mulf %222, %223 : vector<8x128xf32>
    %c32_i32_155 = arith.constant 32 : i32
    %225 = tpu.dynamic_rotate %224 by %c32_i32_155 dim 1 : vector<8x128xf32>, i32 -> vector<8x128xf32>
    %c0_156 = arith.constant 0 : index
    %c0_157 = arith.constant 0 : index
    %226 = vector.load %arg14[%c0_156, %c0_157] : memref<8x128xf32, #tpu.memory_space<vmem>>, vector<8x128xf32>
    %227 = arith.mulf %222, %226 : vector<8x128xf32>
    %228 = arith.addf %227, %225 : vector<8x128xf32>
    %229 = math.tanh %228 : vector<8x128xf32>
    %230 = arith.mulf %223, %229 : vector<8x128xf32>
    %c0_158 = arith.constant 0 : index
    %c0_159 = arith.constant 0 : index
    %231 = vector.load %arg14[%c0_158, %c0_159] : memref<8x128xf32, #tpu.memory_space<vmem>>, vector<8x128xf32>
    tpu.vector_store %arg14[%c0_158, %c0_159], %228 {strides = array<i32>} : memref<8x128xf32, #tpu.memory_space<vmem>>, vector<8x128xf32>,
    %c0_160 = arith.constant 0 : index
    %c0_161 = arith.constant 0 : index
    %232 = vector.load %arg13[%c0_160, %c0_161] : memref<8x128xf32, #tpu.memory_space<vmem>>, vector<8x128xf32>
    tpu.vector_store %arg13[%c0_160, %c0_161], %230 {strides = array<i32>} : memref<8x128xf32, #tpu.memory_space<vmem>>, vector<8x128xf32>,
    %c1_i32_162 = arith.constant 1 : i32
    %c8_i32_163 = arith.constant 8 : i32
    %233 = arith.muli %c1_i32_162, %c8_i32_163 : i32
    %234 = tpu.assume_multiple %233, 8 : i32
    %235 = arith.index_cast %234 : i32 to index
    %c0_164 = arith.constant 0 : index
    %236 = vector.load %arg11[%235, %c0_164] : memref<64x128xf32, #tpu.memory_space<vmem>>, vector<8x128xf32>
    %c0_165 = arith.constant 0 : index
    %c0_166 = arith.constant 0 : index
    %237 = vector.load %arg13[%c0_165, %c0_166] : memref<8x128xf32, #tpu.memory_space<vmem>>, vector<8x128xf32>
    %cst_167 = arith.constant dense<0.000000e+00> : vector<8x128xf32>
    %238 = tpu.matmul %237, %202, %cst_167 {dimension_numbers = #tpu.dot_dimension_numbers<[1], [0], [0], [1], [0, 0, 1, 1], [], []>} : vector<8x128xf32>, vector<128x128xf32>, vector<8x128xf32> -> vector<8x128xf32>
    %239 = arith.addf %236, %238 : vector<8x128xf32>
    %240 = math.tanh %239 : vector<8x128xf32>
    %241 = arith.mulf %240, %8 : vector<8x128xf32>
    %242 = arith.addf %241, %11 : vector<8x128xf32>
    %c64_i32_168 = arith.constant 64 : i32
    %243 = tpu.dynamic_rotate %242 by %c64_i32_168 dim 1 : vector<8x128xf32>, i32 -> vector<8x128xf32>
    %244 = arith.mulf %242, %243 : vector<8x128xf32>
    %c32_i32_169 = arith.constant 32 : i32
    %245 = tpu.dynamic_rotate %244 by %c32_i32_169 dim 1 : vector<8x128xf32>, i32 -> vector<8x128xf32>
    %c0_170 = arith.constant 0 : index
    %c0_171 = arith.constant 0 : index
    %246 = vector.load %arg14[%c0_170, %c0_171] : memref<8x128xf32, #tpu.memory_space<vmem>>, vector<8x128xf32>
    %247 = arith.mulf %242, %246 : vector<8x128xf32>
    %248 = arith.addf %247, %245 : vector<8x128xf32>
    %249 = math.tanh %248 : vector<8x128xf32>
    %250 = arith.mulf %243, %249 : vector<8x128xf32>
    %c0_172 = arith.constant 0 : index
    %c0_173 = arith.constant 0 : index
    %251 = vector.load %arg14[%c0_172, %c0_173] : memref<8x128xf32, #tpu.memory_space<vmem>>, vector<8x128xf32>
    tpu.vector_store %arg14[%c0_172, %c0_173], %248 {strides = array<i32>} : memref<8x128xf32, #tpu.memory_space<vmem>>, vector<8x128xf32>,
    %c0_174 = arith.constant 0 : index
    %c0_175 = arith.constant 0 : index
    %252 = vector.load %arg13[%c0_174, %c0_175] : memref<8x128xf32, #tpu.memory_space<vmem>>, vector<8x128xf32>
    tpu.vector_store %arg13[%c0_174, %c0_175], %250 {strides = array<i32>} : memref<8x128xf32, #tpu.memory_space<vmem>>, vector<8x128xf32>,
    %c2_i32_176 = arith.constant 2 : i32
    %c8_i32_177 = arith.constant 8 : i32
    %253 = arith.muli %c2_i32_176, %c8_i32_177 : i32
    %254 = tpu.assume_multiple %253, 8 : i32
    %255 = arith.index_cast %254 : i32 to index
    %c0_178 = arith.constant 0 : index
    %256 = vector.load %arg11[%255, %c0_178] : memref<64x128xf32, #tpu.memory_space<vmem>>, vector<8x128xf32>
    %c0_179 = arith.constant 0 : index
    %c0_180 = arith.constant 0 : index
    %257 = vector.load %arg13[%c0_179, %c0_180] : memref<8x128xf32, #tpu.memory_space<vmem>>, vector<8x128xf32>
    %cst_181 = arith.constant dense<0.000000e+00> : vector<8x128xf32>
    %258 = tpu.matmul %257, %202, %cst_181 {dimension_numbers = #tpu.dot_dimension_numbers<[1], [0], [0], [1], [0, 0, 1, 1], [], []>} : vector<8x128xf32>, vector<128x128xf32>, vector<8x128xf32> -> vector<8x128xf32>
    %259 = arith.addf %256, %258 : vector<8x128xf32>
    %260 = math.tanh %259 : vector<8x128xf32>
    %261 = arith.mulf %260, %8 : vector<8x128xf32>
    %262 = arith.addf %261, %11 : vector<8x128xf32>
    %c64_i32_182 = arith.constant 64 : i32
    %263 = tpu.dynamic_rotate %262 by %c64_i32_182 dim 1 : vector<8x128xf32>, i32 -> vector<8x128xf32>
    %264 = arith.mulf %262, %263 : vector<8x128xf32>
    %c32_i32_183 = arith.constant 32 : i32
    %265 = tpu.dynamic_rotate %264 by %c32_i32_183 dim 1 : vector<8x128xf32>, i32 -> vector<8x128xf32>
    %c0_184 = arith.constant 0 : index
    %c0_185 = arith.constant 0 : index
    %266 = vector.load %arg14[%c0_184, %c0_185] : memref<8x128xf32, #tpu.memory_space<vmem>>, vector<8x128xf32>
    %267 = arith.mulf %262, %266 : vector<8x128xf32>
    %268 = arith.addf %267, %265 : vector<8x128xf32>
    %269 = math.tanh %268 : vector<8x128xf32>
    %270 = arith.mulf %263, %269 : vector<8x128xf32>
    %c0_186 = arith.constant 0 : index
    %c0_187 = arith.constant 0 : index
    %271 = vector.load %arg14[%c0_186, %c0_187] : memref<8x128xf32, #tpu.memory_space<vmem>>, vector<8x128xf32>
    tpu.vector_store %arg14[%c0_186, %c0_187], %268 {strides = array<i32>} : memref<8x128xf32, #tpu.memory_space<vmem>>, vector<8x128xf32>,
    %c0_188 = arith.constant 0 : index
    %c0_189 = arith.constant 0 : index
    %272 = vector.load %arg13[%c0_188, %c0_189] : memref<8x128xf32, #tpu.memory_space<vmem>>, vector<8x128xf32>
    tpu.vector_store %arg13[%c0_188, %c0_189], %270 {strides = array<i32>} : memref<8x128xf32, #tpu.memory_space<vmem>>, vector<8x128xf32>,
    %c3_i32_190 = arith.constant 3 : i32
    %c8_i32_191 = arith.constant 8 : i32
    %273 = arith.muli %c3_i32_190, %c8_i32_191 : i32
    %274 = tpu.assume_multiple %273, 8 : i32
    %275 = arith.index_cast %274 : i32 to index
    %c0_192 = arith.constant 0 : index
    %276 = vector.load %arg11[%275, %c0_192] : memref<64x128xf32, #tpu.memory_space<vmem>>, vector<8x128xf32>
    %c0_193 = arith.constant 0 : index
    %c0_194 = arith.constant 0 : index
    %277 = vector.load %arg13[%c0_193, %c0_194] : memref<8x128xf32, #tpu.memory_space<vmem>>, vector<8x128xf32>
    %cst_195 = arith.constant dense<0.000000e+00> : vector<8x128xf32>
    %278 = tpu.matmul %277, %202, %cst_195 {dimension_numbers = #tpu.dot_dimension_numbers<[1], [0], [0], [1], [0, 0, 1, 1], [], []>} : vector<8x128xf32>, vector<128x128xf32>, vector<8x128xf32> -> vector<8x128xf32>
    %279 = arith.addf %276, %278 : vector<8x128xf32>
    %280 = math.tanh %279 : vector<8x128xf32>
    %281 = arith.mulf %280, %8 : vector<8x128xf32>
    %282 = arith.addf %281, %11 : vector<8x128xf32>
    %c64_i32_196 = arith.constant 64 : i32
    %283 = tpu.dynamic_rotate %282 by %c64_i32_196 dim 1 : vector<8x128xf32>, i32 -> vector<8x128xf32>
    %284 = arith.mulf %282, %283 : vector<8x128xf32>
    %c32_i32_197 = arith.constant 32 : i32
    %285 = tpu.dynamic_rotate %284 by %c32_i32_197 dim 1 : vector<8x128xf32>, i32 -> vector<8x128xf32>
    %c0_198 = arith.constant 0 : index
    %c0_199 = arith.constant 0 : index
    %286 = vector.load %arg14[%c0_198, %c0_199] : memref<8x128xf32, #tpu.memory_space<vmem>>, vector<8x128xf32>
    %287 = arith.mulf %282, %286 : vector<8x128xf32>
    %288 = arith.addf %287, %285 : vector<8x128xf32>
    %289 = math.tanh %288 : vector<8x128xf32>
    %290 = arith.mulf %283, %289 : vector<8x128xf32>
    %c0_200 = arith.constant 0 : index
    %c0_201 = arith.constant 0 : index
    %291 = vector.load %arg14[%c0_200, %c0_201] : memref<8x128xf32, #tpu.memory_space<vmem>>, vector<8x128xf32>
    tpu.vector_store %arg14[%c0_200, %c0_201], %288 {strides = array<i32>} : memref<8x128xf32, #tpu.memory_space<vmem>>, vector<8x128xf32>,
    %c0_202 = arith.constant 0 : index
    %c0_203 = arith.constant 0 : index
    %292 = vector.load %arg13[%c0_202, %c0_203] : memref<8x128xf32, #tpu.memory_space<vmem>>, vector<8x128xf32>
    tpu.vector_store %arg13[%c0_202, %c0_203], %290 {strides = array<i32>} : memref<8x128xf32, #tpu.memory_space<vmem>>, vector<8x128xf32>,
    %c4_i32_204 = arith.constant 4 : i32
    %c8_i32_205 = arith.constant 8 : i32
    %293 = arith.muli %c4_i32_204, %c8_i32_205 : i32
    %294 = tpu.assume_multiple %293, 8 : i32
    %295 = arith.index_cast %294 : i32 to index
    %c0_206 = arith.constant 0 : index
    %296 = vector.load %arg11[%295, %c0_206] : memref<64x128xf32, #tpu.memory_space<vmem>>, vector<8x128xf32>
    %c0_207 = arith.constant 0 : index
    %c0_208 = arith.constant 0 : index
    %297 = vector.load %arg13[%c0_207, %c0_208] : memref<8x128xf32, #tpu.memory_space<vmem>>, vector<8x128xf32>
    %cst_209 = arith.constant dense<0.000000e+00> : vector<8x128xf32>
    %298 = tpu.matmul %297, %202, %cst_209 {dimension_numbers = #tpu.dot_dimension_numbers<[1], [0], [0], [1], [0, 0, 1, 1], [], []>} : vector<8x128xf32>, vector<128x128xf32>, vector<8x128xf32> -> vector<8x128xf32>
    %299 = arith.addf %296, %298 : vector<8x128xf32>
    %300 = math.tanh %299 : vector<8x128xf32>
    %301 = arith.mulf %300, %8 : vector<8x128xf32>
    %302 = arith.addf %301, %11 : vector<8x128xf32>
    %c64_i32_210 = arith.constant 64 : i32
    %303 = tpu.dynamic_rotate %302 by %c64_i32_210 dim 1 : vector<8x128xf32>, i32 -> vector<8x128xf32>
    %304 = arith.mulf %302, %303 : vector<8x128xf32>
    %c32_i32_211 = arith.constant 32 : i32
    %305 = tpu.dynamic_rotate %304 by %c32_i32_211 dim 1 : vector<8x128xf32>, i32 -> vector<8x128xf32>
    %c0_212 = arith.constant 0 : index
    %c0_213 = arith.constant 0 : index
    %306 = vector.load %arg14[%c0_212, %c0_213] : memref<8x128xf32, #tpu.memory_space<vmem>>, vector<8x128xf32>
    %307 = arith.mulf %302, %306 : vector<8x128xf32>
    %308 = arith.addf %307, %305 : vector<8x128xf32>
    %309 = math.tanh %308 : vector<8x128xf32>
    %310 = arith.mulf %303, %309 : vector<8x128xf32>
    %c0_214 = arith.constant 0 : index
    %c0_215 = arith.constant 0 : index
    %311 = vector.load %arg14[%c0_214, %c0_215] : memref<8x128xf32, #tpu.memory_space<vmem>>, vector<8x128xf32>
    tpu.vector_store %arg14[%c0_214, %c0_215], %308 {strides = array<i32>} : memref<8x128xf32, #tpu.memory_space<vmem>>, vector<8x128xf32>,
    %c0_216 = arith.constant 0 : index
    %c0_217 = arith.constant 0 : index
    %312 = vector.load %arg13[%c0_216, %c0_217] : memref<8x128xf32, #tpu.memory_space<vmem>>, vector<8x128xf32>
    tpu.vector_store %arg13[%c0_216, %c0_217], %310 {strides = array<i32>} : memref<8x128xf32, #tpu.memory_space<vmem>>, vector<8x128xf32>,
    %c5_i32_218 = arith.constant 5 : i32
    %c8_i32_219 = arith.constant 8 : i32
    %313 = arith.muli %c5_i32_218, %c8_i32_219 : i32
    %314 = tpu.assume_multiple %313, 8 : i32
    %315 = arith.index_cast %314 : i32 to index
    %c0_220 = arith.constant 0 : index
    %316 = vector.load %arg11[%315, %c0_220] : memref<64x128xf32, #tpu.memory_space<vmem>>, vector<8x128xf32>
    %c0_221 = arith.constant 0 : index
    %c0_222 = arith.constant 0 : index
    %317 = vector.load %arg13[%c0_221, %c0_222] : memref<8x128xf32, #tpu.memory_space<vmem>>, vector<8x128xf32>
    %cst_223 = arith.constant dense<0.000000e+00> : vector<8x128xf32>
    %318 = tpu.matmul %317, %202, %cst_223 {dimension_numbers = #tpu.dot_dimension_numbers<[1], [0], [0], [1], [0, 0, 1, 1], [], []>} : vector<8x128xf32>, vector<128x128xf32>, vector<8x128xf32> -> vector<8x128xf32>
    %319 = arith.addf %316, %318 : vector<8x128xf32>
    %320 = math.tanh %319 : vector<8x128xf32>
    %321 = arith.mulf %320, %8 : vector<8x128xf32>
    %322 = arith.addf %321, %11 : vector<8x128xf32>
    %c64_i32_224 = arith.constant 64 : i32
    %323 = tpu.dynamic_rotate %322 by %c64_i32_224 dim 1 : vector<8x128xf32>, i32 -> vector<8x128xf32>
    %324 = arith.mulf %322, %323 : vector<8x128xf32>
    %c32_i32_225 = arith.constant 32 : i32
    %325 = tpu.dynamic_rotate %324 by %c32_i32_225 dim 1 : vector<8x128xf32>, i32 -> vector<8x128xf32>
    %c0_226 = arith.constant 0 : index
    %c0_227 = arith.constant 0 : index
    %326 = vector.load %arg14[%c0_226, %c0_227] : memref<8x128xf32, #tpu.memory_space<vmem>>, vector<8x128xf32>
    %327 = arith.mulf %322, %326 : vector<8x128xf32>
    %328 = arith.addf %327, %325 : vector<8x128xf32>
    %329 = math.tanh %328 : vector<8x128xf32>
    %330 = arith.mulf %323, %329 : vector<8x128xf32>
    %c0_228 = arith.constant 0 : index
    %c0_229 = arith.constant 0 : index
    %331 = vector.load %arg14[%c0_228, %c0_229] : memref<8x128xf32, #tpu.memory_space<vmem>>, vector<8x128xf32>
    tpu.vector_store %arg14[%c0_228, %c0_229], %328 {strides = array<i32>} : memref<8x128xf32, #tpu.memory_space<vmem>>, vector<8x128xf32>,
    %c0_230 = arith.constant 0 : index
    %c0_231 = arith.constant 0 : index
    %332 = vector.load %arg13[%c0_230, %c0_231] : memref<8x128xf32, #tpu.memory_space<vmem>>, vector<8x128xf32>
    tpu.vector_store %arg13[%c0_230, %c0_231], %330 {strides = array<i32>} : memref<8x128xf32, #tpu.memory_space<vmem>>, vector<8x128xf32>,
    %c6_i32_232 = arith.constant 6 : i32
    %c8_i32_233 = arith.constant 8 : i32
    %333 = arith.muli %c6_i32_232, %c8_i32_233 : i32
    %334 = tpu.assume_multiple %333, 8 : i32
    %335 = arith.index_cast %334 : i32 to index
    %c0_234 = arith.constant 0 : index
    %336 = vector.load %arg11[%335, %c0_234] : memref<64x128xf32, #tpu.memory_space<vmem>>, vector<8x128xf32>
    %c0_235 = arith.constant 0 : index
    %c0_236 = arith.constant 0 : index
    %337 = vector.load %arg13[%c0_235, %c0_236] : memref<8x128xf32, #tpu.memory_space<vmem>>, vector<8x128xf32>
    %cst_237 = arith.constant dense<0.000000e+00> : vector<8x128xf32>
    %338 = tpu.matmul %337, %202, %cst_237 {dimension_numbers = #tpu.dot_dimension_numbers<[1], [0], [0], [1], [0, 0, 1, 1], [], []>} : vector<8x128xf32>, vector<128x128xf32>, vector<8x128xf32> -> vector<8x128xf32>
    %339 = arith.addf %336, %338 : vector<8x128xf32>
    %340 = math.tanh %339 : vector<8x128xf32>
    %341 = arith.mulf %340, %8 : vector<8x128xf32>
    %342 = arith.addf %341, %11 : vector<8x128xf32>
    %c64_i32_238 = arith.constant 64 : i32
    %343 = tpu.dynamic_rotate %342 by %c64_i32_238 dim 1 : vector<8x128xf32>, i32 -> vector<8x128xf32>
    %344 = arith.mulf %342, %343 : vector<8x128xf32>
    %c32_i32_239 = arith.constant 32 : i32
    %345 = tpu.dynamic_rotate %344 by %c32_i32_239 dim 1 : vector<8x128xf32>, i32 -> vector<8x128xf32>
    %c0_240 = arith.constant 0 : index
    %c0_241 = arith.constant 0 : index
    %346 = vector.load %arg14[%c0_240, %c0_241] : memref<8x128xf32, #tpu.memory_space<vmem>>, vector<8x128xf32>
    %347 = arith.mulf %342, %346 : vector<8x128xf32>
    %348 = arith.addf %347, %345 : vector<8x128xf32>
    %349 = math.tanh %348 : vector<8x128xf32>
    %350 = arith.mulf %343, %349 : vector<8x128xf32>
    %c0_242 = arith.constant 0 : index
    %c0_243 = arith.constant 0 : index
    %351 = vector.load %arg14[%c0_242, %c0_243] : memref<8x128xf32, #tpu.memory_space<vmem>>, vector<8x128xf32>
    tpu.vector_store %arg14[%c0_242, %c0_243], %348 {strides = array<i32>} : memref<8x128xf32, #tpu.memory_space<vmem>>, vector<8x128xf32>,
    %c0_244 = arith.constant 0 : index
    %c0_245 = arith.constant 0 : index
    %352 = vector.load %arg13[%c0_244, %c0_245] : memref<8x128xf32, #tpu.memory_space<vmem>>, vector<8x128xf32>
    tpu.vector_store %arg13[%c0_244, %c0_245], %350 {strides = array<i32>} : memref<8x128xf32, #tpu.memory_space<vmem>>, vector<8x128xf32>,
    %c7_i32_246 = arith.constant 7 : i32
    %c8_i32_247 = arith.constant 8 : i32
    %353 = arith.muli %c7_i32_246, %c8_i32_247 : i32
    %354 = tpu.assume_multiple %353, 8 : i32
    %355 = arith.index_cast %354 : i32 to index
    %c0_248 = arith.constant 0 : index
    %356 = vector.load %arg11[%355, %c0_248] : memref<64x128xf32, #tpu.memory_space<vmem>>, vector<8x128xf32>
    %c0_249 = arith.constant 0 : index
    %c0_250 = arith.constant 0 : index
    %357 = vector.load %arg13[%c0_249, %c0_250] : memref<8x128xf32, #tpu.memory_space<vmem>>, vector<8x128xf32>
    %cst_251 = arith.constant dense<0.000000e+00> : vector<8x128xf32>
    %358 = tpu.matmul %357, %202, %cst_251 {dimension_numbers = #tpu.dot_dimension_numbers<[1], [0], [0], [1], [0, 0, 1, 1], [], []>} : vector<8x128xf32>, vector<128x128xf32>, vector<8x128xf32> -> vector<8x128xf32>
    %359 = arith.addf %356, %358 : vector<8x128xf32>
    %360 = math.tanh %359 : vector<8x128xf32>
    %361 = arith.mulf %360, %8 : vector<8x128xf32>
    %362 = arith.addf %361, %11 : vector<8x128xf32>
    %c64_i32_252 = arith.constant 64 : i32
    %363 = tpu.dynamic_rotate %362 by %c64_i32_252 dim 1 : vector<8x128xf32>, i32 -> vector<8x128xf32>
    %364 = arith.mulf %362, %363 : vector<8x128xf32>
    %c32_i32_253 = arith.constant 32 : i32
    %365 = tpu.dynamic_rotate %364 by %c32_i32_253 dim 1 : vector<8x128xf32>, i32 -> vector<8x128xf32>
    %c0_254 = arith.constant 0 : index
    %c0_255 = arith.constant 0 : index
    %366 = vector.load %arg14[%c0_254, %c0_255] : memref<8x128xf32, #tpu.memory_space<vmem>>, vector<8x128xf32>
    %367 = arith.mulf %362, %366 : vector<8x128xf32>
    %368 = arith.addf %367, %365 : vector<8x128xf32>
    %369 = math.tanh %368 : vector<8x128xf32>
    %370 = arith.mulf %363, %369 : vector<8x128xf32>
    %c0_256 = arith.constant 0 : index
    %c0_257 = arith.constant 0 : index
    %371 = vector.load %arg14[%c0_256, %c0_257] : memref<8x128xf32, #tpu.memory_space<vmem>>, vector<8x128xf32>
    tpu.vector_store %arg14[%c0_256, %c0_257], %368 {strides = array<i32>} : memref<8x128xf32, #tpu.memory_space<vmem>>, vector<8x128xf32>,
    %c0_258 = arith.constant 0 : index
    %c0_259 = arith.constant 0 : index
    %372 = vector.load %arg13[%c0_258, %c0_259] : memref<8x128xf32, #tpu.memory_space<vmem>>, vector<8x128xf32>
    tpu.vector_store %arg13[%c0_258, %c0_259], %370 {strides = array<i32>} : memref<8x128xf32, #tpu.memory_space<vmem>>, vector<8x128xf32>,
    %c8_i32_260 = arith.constant 8 : i32
    %c0_261 = arith.constant 0 : index
    %c0_262 = arith.constant 0 : index
    %373 = vector.load %arg13[%c0_261, %c0_262] : memref<8x128xf32, #tpu.memory_space<vmem>>, vector<8x128xf32>
    %c0_263 = arith.constant 0 : index
    %c0_264 = arith.constant 0 : index
    %374 = vector.load %arg8[%c0_263, %c0_264] : memref<128x128xf32, #tpu.memory_space<vmem>>, vector<128x128xf32>
    %cst_265 = arith.constant dense<0.000000e+00> : vector<8x128xf32>
    %375 = tpu.matmul %373, %374, %cst_265 {dimension_numbers = #tpu.dot_dimension_numbers<[1], [0], [0], [1], [0, 0, 1, 1], [], []>} : vector<8x128xf32>, vector<128x128xf32>, vector<8x128xf32> -> vector<8x128xf32>
    %c0_266 = arith.constant 0 : index
    %c0_267 = arith.constant 0 : index
    %376 = vector.load %arg9[%c0_266, %c0_267] : memref<1x128xf32, #tpu.memory_space<vmem>>, vector<1x128xf32>
    %377 = vector.broadcast %376 : vector<1x128xf32> to vector<8x128xf32>
    %378 = arith.addf %375, %377 : vector<8x128xf32>
    %c0_268 = arith.constant 0 : index
    %c0_269 = arith.constant 0 : index
    %c0_270 = arith.constant 0 : index
    %379 = vector.load %arg10[%c0_268, %c0_269, %c0_270] : memref<1x8x128xf32, #tpu.memory_space<vmem>>, vector<1x8x128xf32>
    %380 = vector.shape_cast %379 : vector<1x8x128xf32> to vector<8x128xf32>
    %381 = vector.shape_cast %378 : vector<8x128xf32> to vector<1x8x128xf32>
    tpu.vector_store %arg10[%c0_268, %c0_269, %c0_270], %381 {strides = array<i32>} : memref<1x8x128xf32, #tpu.memory_space<vmem>>, vector<1x8x128xf32>,
    return
  }
  func.func @transform_0(%arg0: i32) -> (i32, i32, i32) {
    %c0_i32 = arith.constant 0 : i32
    %c0_i32_0 = arith.constant 0 : i32
    %c0_i32_1 = arith.constant 0 : i32
    return %arg0, %c0_i32, %c0_i32_0 : i32, i32, i32
  }
  func.func @transform_1(%arg0: i32) -> (i32, i32) {
    %c0_i32 = arith.constant 0 : i32
    %c0_i32_0 = arith.constant 0 : i32
    %c0_i32_1 = arith.constant 0 : i32
    return %c0_i32, %c0_i32_0 : i32, i32
  }
  func.func @transform_2(%arg0: i32) -> (i32, i32) {
    %c0_i32 = arith.constant 0 : i32
    %c0_i32_0 = arith.constant 0 : i32
    %c0_i32_1 = arith.constant 0 : i32
    return %c0_i32, %c0_i32_0 : i32, i32
  }
  func.func @transform_3(%arg0: i32) -> (i32, i32) {
    %c0_i32 = arith.constant 0 : i32
    %c0_i32_0 = arith.constant 0 : i32
    %c0_i32_1 = arith.constant 0 : i32
    return %c0_i32, %c0_i32_0 : i32, i32
  }
  func.func @transform_4(%arg0: i32) -> (i32, i32) {
    %c0_i32 = arith.constant 0 : i32
    %c0_i32_0 = arith.constant 0 : i32
    %c0_i32_1 = arith.constant 0 : i32
    return %c0_i32, %c0_i32_0 : i32, i32
  }
  func.func @transform_5(%arg0: i32) -> (i32, i32) {
    %c0_i32 = arith.constant 0 : i32
    %c0_i32_0 = arith.constant 0 : i32
    %c0_i32_1 = arith.constant 0 : i32
    return %c0_i32, %c0_i32_0 : i32, i32
  }
  func.func @transform_6(%arg0: i32) -> (i32, i32) {
    %c0_i32 = arith.constant 0 : i32
    %c0_i32_0 = arith.constant 0 : i32
    %c0_i32_1 = arith.constant 0 : i32
    return %c0_i32, %c0_i32_0 : i32, i32
  }
  func.func @transform_7(%arg0: i32) -> (i32, i32) {
    %c0_i32 = arith.constant 0 : i32
    %c0_i32_0 = arith.constant 0 : i32
    %c0_i32_1 = arith.constant 0 : i32
    return %c0_i32, %c0_i32_0 : i32, i32
  }
  func.func @transform_8(%arg0: i32) -> (i32, i32) {
    %c0_i32 = arith.constant 0 : i32
    %c0_i32_0 = arith.constant 0 : i32
    %c0_i32_1 = arith.constant 0 : i32
    return %c0_i32, %c0_i32_0 : i32, i32
  }
  func.func @transform_9(%arg0: i32) -> (i32, i32, i32) {
    %c0_i32 = arith.constant 0 : i32
    %c0_i32_0 = arith.constant 0 : i32
    %c0_i32_1 = arith.constant 0 : i32
    return %arg0, %c0_i32, %c0_i32_0 : i32, i32, i32
  }
}

</mosaic_0001>

<bundles_post_ra>
// kernel: tpu_custom_call.1
= control target key start
LH: loop header
LB: loop body
LE: loop exit
PB: predicated region body
PF: predicated region fallthrough
CT: control target
= control target key end

     0   :  { %14 = vsyncpa [#allocation7], 0  ;;  %s1768_s0 = inlined_call_operand.vmem [shape: f32[1,64,4], index: 0, kind: input, shape index: {}]   ;;  %s1769_s1 = inlined_call_operand.vmem [shape: f32[4,128], index: 1, kind: input, shape index: {}]   ;;  %s1770_s2 = inlined_call_operand.hbm [shape: f32[128,128], index: 2, kind: input, shape index: {}]   ;;  %s1771_s3 = inlined_call_operand.vmem [shape: f32[1,128], index: 3, kind: input, shape index: {}]   ;;  %s1772_s4 = inlined_call_operand.hbm [shape: f32[128,128], index: 4, kind: input, shape index: {}]   ;;  %s1773_s5 = inlined_call_operand.hbm [shape: f32[128,128], index: 5, kind: input, shape index: {}]   ;;  %s1774_s6 = inlined_call_operand.vmem [shape: f32[1,128], index: 6, kind: input, shape index: {}]   ;;  %s1775_s7 = inlined_call_operand.hbm [shape: f32[128,128], index: 7, kind: input, shape index: {}]   ;;  %s1776_s8 = inlined_call_operand.vmem [shape: f32[1,128], index: 8, kind: input, shape index: {}]   ;;  %s1777_s9 = inlined_call_operand.hbm [shape: f32[1,8,128], index: 9, kind: output, shape index: {}]  }
   0x1   :  { %15 = vsyncpa [#allocation10], 0 }
   0x2   :  { %16 = vsyncpa [#allocation13], 0 }
   0x3   :  { %17 = vsyncpa [#allocation8], 0  ;;  %s41_s11 = sshll.u32 %s1772_s4, 4  ;;  %s1213_s12 = smov [#allocation9]   ;;  %s42_s11 = int_to_ptr.hbm [resolvable:$true] %s41_s11 }
   0x4   :  { %s43_s13 = sshll.u32 %s1213_s12, 4  ;;  %s26_s16 = sshll.u32 %s1770_s2, 4  ;;  %s44_s13 = int_to_ptr.vmem [resolvable:$true] %s43_s13  ;;  %s27_s16 = int_to_ptr.hbm [resolvable:$true] %s26_s16 }
   0x5   :  { %s1214_s17 = smov 128   ;;  %s1215_s18 = smov 8  }
   0x6   :  { %49 = dma.hbm_to_vmem [thread:$0]  %s42_s11, 2048, %s44_s13, [#allocation10], %s1214_s17, %s1214_s17, %s1215_s18  }
   0x7   :  { %s1216_s19 = smov [#allocation6]   ;;  %s54_s23 = sshll.u32 %s1773_s5, 4  ;;  %s55_s23 = int_to_ptr.hbm [resolvable:$true] %s54_s23 }
   0x8   :  { %s28_s20 = sshll.u32 %s1216_s19, 4  ;;  %s69_s25 = sshll.u32 %s1775_s7, 4  ;;  %s29_s20 = int_to_ptr.vmem [resolvable:$true] %s28_s20  ;;  %s70_s25 = int_to_ptr.hbm [resolvable:$true] %s69_s25 }
   0x9   :  { %34 = dma.hbm_to_vmem [thread:$0]  %s27_s16, 2048, %s29_s20, [#allocation7], %s1214_s17, %s1214_s17, %s1215_s18  }
   0xa   :  { %s1217_s26 = smov [#allocation11]   ;;  %s1218_s2 = smov [#allocation12]  }
   0xb   :  { %s56_s27 = sshll.u32 %s1217_s26, 4  ;;  %s71_s28 = sshll.u32 %s1218_s2, 4  ;;  %s57_s27 = int_to_ptr.vmem [resolvable:$true] %s56_s27  ;;  %s72_s28 = int_to_ptr.vmem [resolvable:$true] %s71_s28 }
   0xc   :  { %62 = dma.hbm_to_vmem [thread:$0]  %s55_s23, 2048, %s57_s27, [#allocation10], %s1214_s17, %s1214_s17, %s1215_s18  }
   0xd   :  { %77 = dma.hbm_to_vmem [thread:$0]  %s70_s25, 2048, %s72_s28, [#allocation13], %s1214_s17, %s1214_s17, %s1215_s18  }
   0xe   :  { %1205 = dma.done.wait [#allocation7], 2048  }
   0xf   :  { %1206 = vsyncadd [#allocation7], 4294965248 }
  0x10   :  { %1207 = dma.done.wait [#allocation10], 4096  }
  0x11   :  { %1208 = vsyncadd [#allocation10], 4294963200 }
  0x12   :  { %1209 = dma.done.wait [#allocation13], 2048  }
  0x13   :  { %1210 = vsyncadd [#allocation13], 4294965248  ;;  %v1286_v0 = vld [vmem:[#allocation6 + $0x78] sm:$0xff]  ;;  %v1288_v1 = vld [vmem:[#allocation6 + $0x70] sm:$0xff]  ;;  %vm157_vm0 = vcmask 1043456   ;;  %vm132_vm1 = vcmask 31744   ;;  %v96_v20 = vlaneseq }
  0x14   :  { %214 = vmatpush.msra.mxu1 %v1286_v0  ;;  %254 = vmatpush.msra.mxu2 %v1286_v0  ;;  %v1292_v2 = vld [vmem:[#allocation6 + $0x68] sm:$0xff]  ;;  %v1297_v3 = vld [vmem:[#allocation6 + $0x60] sm:$0xff]  ;;  %v1307_v6 = vld [vmem:[#allocation6 + $0x58] sm:$0xff]  ;;  %v1219_v18 = vmov 0.0   ;;  %v1220_v26 = vmov 0.5   ;;  %s1222_s11 = smov 32  }
  0x15   :  { %295 = vmatpush.msra.mxu3 %v1286_v0  ;;  %v103_v4 = vld [vmem:[%s1769_s1] sm:$0xf]  ;;  %v1313_v7 = vld [vmem:[#allocation6 + $0x50] sm:$0xff]  ;;  %v1319_v8 = vld [vmem:[#allocation6 + $0x48] sm:$0xff]  ;;  %v97_v23 = vand.u32 127, %v96_v20  ;;  %s1223_s27 = smov [#allocation14]  }
  0x16   :  { %215 = vmatpush.msra.mxu1 %v1288_v1  ;;  %255 = vmatpush.msra.mxu2 %v1288_v1  ;;  %v121_v5 = vld [vmem:[%s1768_s0] sm:$0xff]  ;;  %v1331_v10 = vld [vmem:[#allocation6 + $0x38] sm:$0xff]  ;;  %v1337_v11 = vld [vmem:[#allocation6 + $0x30] sm:$0xff]  ;;  %s984_s2 = sshll.u32 %s1223_s27, 4  ;;  %s986_s7 = sshll.u32 %s1777_s9, 4  ;;  %s985_s2 = int_to_ptr.vmem [resolvable:$true] %s984_s2  ;;  %s987_s7 = int_to_ptr.hbm [resolvable:$true] %s986_s7 }
  0x17   :  { %296 = vmatpush.msra.mxu3 %v1288_v1  ;;  %998 = vmatpush.msk.msra.mxu0 %vm157_vm0, %v103_v4  ;;  %v1325_v9 = vld [vmem:[#allocation6 + $0x40] sm:$0xff]  ;;  %v1343_v12 = vld [vmem:[#allocation6 + $0x28] sm:$0xff]  ;;  %v1355_v14 = vld [vmem:[#allocation6 + $0x18] sm:$0xff]  ;;  %vm98_vm2 = vcmp.ge.s32.totalorder %v97_v23, 64  ;;  %vm99_vm3 = vcmp.lt.s32.totalorder %v97_v23, 96 }
  0x18   :  { %216 = vmatpush.msra.mxu1 %v1292_v2  ;;  %999 = vmatmul.msk.f32.vlgmr.msra.gmra.mxu0 %vm132_vm1, %v121_v5  ;;  %v1349_v13 = vld [vmem:[#allocation6 + $0x20] sm:$0xff]  ;;  %v1361_v15 = vld [vmem:[#allocation6 + $0x10] sm:$0xff]  ;;  %v1367_v16 = vld [vmem:[#allocation6 + $0x8] sm:$0xff] }
  0x19   :  { %256 = vmatpush.msra.mxu2 %v1292_v2  ;;  %297 = vmatpush.msra.mxu3 %v1292_v2  ;;  %v1373_v17 = vld [vmem:[#allocation6] sm:$0xff]  ;;  %vm100_vm4 = vmand %vm98_vm2, %vm99_vm3  ;;  %v122_v34 = vld [vmem:[%s1768_s0 + $0x8] sm:$0xff] }
  0x1a   :  { %217 = vmatpush.msra.mxu1 %v1297_v3  ;;  %459 = vmatpush.msrb.mxu0 %v1286_v0  ;;  %v1457_v19 = vld [vmem:[%s1771_s3] ss:$0 sm:$0xff]  ;;  %v1460_v27 = vsel %vm100_vm4, 1.0, %v1220_v26  ;;  %v1462_v29 = vsel %vm100_vm4, 0.0, %v1220_v26  ;;  %s1221_s3 = smov 64   ;;  %v123_v49 = vld [vmem:[%s1768_s0 + $0x10] sm:$0xff] }
  0x1b   :  { %257 = vmatpush.msra.mxu2 %v1297_v3  ;;  %298 = vmatpush.msra.mxu3 %v1297_v3  ;;  %v548_v20 = vld [vmem:[#allocation9 + $0x50] sm:$0xff]  ;;  %v547_v23 = vld [vmem:[#allocation9 + $0x48] sm:$0xff] }
  0x1c   :  { %218 = vmatpush.msra.mxu1 %v1307_v6  ;;  %460 = vmatpush.msrb.mxu0 %v1288_v1  ;;  %v544_v26 = vld [vmem:[#allocation9 + $0x30] sm:$0xff] }
  0x1d   :  { %258 = vmatpush.msra.mxu2 %v1307_v6  ;;  %299 = vmatpush.msra.mxu3 %v1307_v6 }
  0x1e   :  { %219 = vmatpush.msra.mxu1 %v1313_v7  ;;  %461 = vmatpush.msrb.mxu0 %v1292_v2 }
  0x1f   :  { %259 = vmatpush.msra.mxu2 %v1313_v7  ;;  %300 = vmatpush.msra.mxu3 %v1313_v7 }
  0x20   :  { %220 = vmatpush.msra.mxu1 %v1319_v8  ;;  %462 = vmatpush.msrb.mxu0 %v1297_v3 }
  0x21   :  { %260 = vmatpush.msra.mxu2 %v1319_v8  ;;  %301 = vmatpush.msra.mxu3 %v1319_v8 }
  0x22   :  { %221 = vmatpush.msra.mxu1 %v1325_v9  ;;  %463 = vmatpush.msrb.mxu0 %v1307_v6 }
  0x23   :  { %261 = vmatpush.msra.mxu2 %v1325_v9  ;;  %302 = vmatpush.msra.mxu3 %v1325_v9 }
  0x24   :  { %222 = vmatpush.msra.mxu1 %v1331_v10  ;;  %464 = vmatpush.msrb.mxu0 %v1313_v7 }
  0x25   :  { %262 = vmatpush.msra.mxu2 %v1331_v10  ;;  %303 = vmatpush.msra.mxu3 %v1331_v10 }
  0x26   :  { %223 = vmatpush.msra.mxu1 %v1337_v11  ;;  %465 = vmatpush.msrb.mxu0 %v1319_v8 }
  0x27   :  { %263 = vmatpush.msra.mxu2 %v1337_v11  ;;  %304 = vmatpush.msra.mxu3 %v1337_v11 }
  0x28   :  { %224 = vmatpush.msra.mxu1 %v1343_v12  ;;  %466 = vmatpush.msrb.mxu0 %v1325_v9 }
  0x29   :  { %264 = vmatpush.msra.mxu2 %v1343_v12  ;;  %305 = vmatpush.msra.mxu3 %v1343_v12 }
  0x2a   :  { %225 = vmatpush.msra.mxu1 %v1349_v13  ;;  %467 = vmatpush.msrb.mxu0 %v1331_v10 }
  0x2b   :  { %265 = vmatpush.msra.mxu2 %v1349_v13  ;;  %306 = vmatpush.msra.mxu3 %v1349_v13 }
  0x2c   :  { %226 = vmatpush.msra.mxu1 %v1355_v14  ;;  %468 = vmatpush.msrb.mxu0 %v1337_v11 }
  0x2d   :  { %266 = vmatpush.msra.mxu2 %v1355_v14  ;;  %307 = vmatpush.msra.mxu3 %v1355_v14 }
  0x2e   :  { %227 = vmatpush.msra.mxu1 %v1361_v15  ;;  %469 = vmatpush.msrb.mxu0 %v1343_v12 }
  0x2f   :  { %267 = vmatpush.msra.mxu2 %v1361_v15  ;;  %308 = vmatpush.msra.mxu3 %v1361_v15 }
  0x30   :  { %228 = vmatpush.msra.mxu1 %v1367_v16  ;;  %470 = vmatpush.msrb.mxu0 %v1349_v13 }
  0x31   :  { %268 = vmatpush.msra.mxu2 %v1367_v16  ;;  %309 = vmatpush.msra.mxu3 %v1367_v16 }
  0x32   :  { %229 = vmatpush.msra.mxu1 %v1373_v17  ;;  %471 = vmatpush.msrb.mxu0 %v1355_v14 }
  0x33   :  { %230 = vmatmul.f32.vlgmr.msra.gmra.mxu1 %v1219_v18  ;;  %269 = vmatpush.msra.mxu2 %v1373_v17 }
  0x34   :  { %310 = vmatpush.msra.mxu3 %v1373_v17  ;;  %336 = vmatpush.msrb.mxu1 %v1286_v0 }
  0x35   :  { %377 = vmatpush.msrb.mxu2 %v1286_v0  ;;  %472 = vmatpush.msrb.mxu0 %v1361_v15 }
  0x36   :  { %418 = vmatpush.msrb.mxu3 %v1286_v0  ;;  %337 = vmatpush.msrb.mxu1 %v1288_v1 }
  0x37   :  { %378 = vmatpush.msrb.mxu2 %v1288_v1  ;;  %473 = vmatpush.msrb.mxu0 %v1367_v16 }
  0x38   :  { %419 = vmatpush.msrb.mxu3 %v1288_v1  ;;  %338 = vmatpush.msrb.mxu1 %v1292_v2 }
  0x39   :  { %379 = vmatpush.msrb.mxu2 %v1292_v2  ;;  %474 = vmatpush.msrb.mxu0 %v1373_v17 }
  0x3a   :  { %420 = vmatpush.msrb.mxu3 %v1292_v2  ;;  %339 = vmatpush.msrb.mxu1 %v1297_v3 }
  0x3b   :  { %380 = vmatpush.msrb.mxu2 %v1297_v3  ;;  %1000 = vmatmul.msk.f32.gmra.mxu0 %vm132_vm1, %v122_v34  ;;  %v539_v34 = vld [vmem:[#allocation9 + $0x8] sm:$0xff] }
  0x3c   :  { %421 = vmatpush.msrb.mxu3 %v1297_v3  ;;  %340 = vmatpush.msrb.mxu1 %v1307_v6 }
  0x3d   :  { %381 = vmatpush.msrb.mxu2 %v1307_v6 }
  0x3e   :  { %422 = vmatpush.msrb.mxu3 %v1307_v6  ;;  %341 = vmatpush.msrb.mxu1 %v1313_v7 }
  0x3f   :  { %382 = vmatpush.msrb.mxu2 %v1313_v7 }
  0x40   :  { %423 = vmatpush.msrb.mxu3 %v1313_v7  ;;  %342 = vmatpush.msrb.mxu1 %v1319_v8 }
  0x41   :  { %383 = vmatpush.msrb.mxu2 %v1319_v8 }
  0x42   :  { %424 = vmatpush.msrb.mxu3 %v1319_v8  ;;  %343 = vmatpush.msrb.mxu1 %v1325_v9 }
  0x43   :  { %384 = vmatpush.msrb.mxu2 %v1325_v9  ;;  %1001 = vmatmul.msk.f32.gmra.mxu0 %vm132_vm1, %v123_v49  ;;  %v1519_v49 = vld [vmem:[#allocation11 + $0x70] sm:$0xff] }
  0x44   :  { %425 = vmatpush.msrb.mxu3 %v1325_v9  ;;  %344 = vmatpush.msrb.mxu1 %v1331_v10 }
  0x45   :  { %385 = vmatpush.msrb.mxu2 %v1331_v10 }
  0x46   :  { %426 = vmatpush.msrb.mxu3 %v1331_v10  ;;  %345 = vmatpush.msrb.mxu1 %v1337_v11 }
  0x47   :  { %386 = vmatpush.msrb.mxu2 %v1337_v11 }
  0x48   :  { %427 = vmatpush.msrb.mxu3 %v1337_v11  ;;  %346 = vmatpush.msrb.mxu1 %v1343_v12 }
  0x49   :  { %387 = vmatpush.msrb.mxu2 %v1343_v12 }
  0x4a   :  { %428 = vmatpush.msrb.mxu3 %v1343_v12  ;;  %347 = vmatpush.msrb.mxu1 %v1349_v13 }
  0x4b   :  { %388 = vmatpush.msrb.mxu2 %v1349_v13 }
  0x4c   :  { %429 = vmatpush.msrb.mxu3 %v1349_v13  ;;  %348 = vmatpush.msrb.mxu1 %v1355_v14 }
  0x4d   :  { %389 = vmatpush.msrb.mxu2 %v1355_v14 }
  0x4e   :  { %430 = vmatpush.msrb.mxu3 %v1355_v14  ;;  %349 = vmatpush.msrb.mxu1 %v1361_v15 }
  0x4f   :  { %390 = vmatpush.msrb.mxu2 %v1361_v15 }
  0x50   :  { %431 = vmatpush.msrb.mxu3 %v1361_v15  ;;  %350 = vmatpush.msrb.mxu1 %v1367_v16 }
  0x51   :  { %391 = vmatpush.msrb.mxu2 %v1367_v16 }
  0x52   :  { %432 = vmatpush.msrb.mxu3 %v1367_v16  ;;  %351 = vmatpush.msrb.mxu1 %v1373_v17 }
  0x53   :  { %392 = vmatpush.msrb.mxu2 %v1373_v17 }
  0x54   :  { %433 = vmatpush.msrb.mxu3 %v1373_v17  ;;  %500 = vmatpush.msra.mxu1 %v1286_v0  ;;  %v124_v0 = vld [vmem:[%s1768_s0 + $0x18] sm:$0xff] }
  0x55   :  { %1002 = vmatmul.msk.f32.gmra.mxu0 %vm132_vm1, %v124_v0  ;;  %v126_v0 = vld [vmem:[%s1768_s0 + $0x28] sm:$0xff] }
  0x56   :  { %501 = vmatpush.msra.mxu1 %v1288_v1 }
  0x58   :  { %502 = vmatpush.msra.mxu1 %v1292_v2 }
  0x5a   :  { %503 = vmatpush.msra.mxu1 %v1297_v3 }
  0x5c   :  { %504 = vmatpush.msra.mxu1 %v1307_v6 }
  0x5e   :  { %505 = vmatpush.msra.mxu1 %v1313_v7 }
  0x60   :  { %506 = vmatpush.msra.mxu1 %v1319_v8 }
  0x62   :  { %507 = vmatpush.msra.mxu1 %v1325_v9 }
  0x64   :  { %508 = vmatpush.msra.mxu1 %v1331_v10 }
  0x66   :  { %509 = vmatpush.msra.mxu1 %v1337_v11 }
  0x68   :  { %510 = vmatpush.msra.mxu1 %v1343_v12 }
  0x6a   :  { %511 = vmatpush.msra.mxu1 %v1349_v13  ;;  %v553_v13 = vld [vmem:[#allocation9 + $0x78] sm:$0xff] }
  0x6c   :  { %512 = vmatpush.msra.mxu1 %v1355_v14  ;;  %v552_v14 = vld [vmem:[#allocation9 + $0x70] sm:$0xff] }
  0x6e   :  { %513 = vmatpush.msra.mxu1 %v1361_v15  ;;  %v551_v15 = vld [vmem:[#allocation9 + $0x68] sm:$0xff] }
  0x70   :  { %514 = vmatpush.msra.mxu1 %v1367_v16  ;;  %v550_v16 = vld [vmem:[#allocation9 + $0x60] sm:$0xff] }
  0x72   :  { %515 = vmatpush.msra.mxu1 %v1373_v17  ;;  %v549_v17 = vld [vmem:[#allocation9 + $0x58] sm:$0xff] }
  0x95   :  { %v178_v21 = vpop.f32.mrf.mxu0 }
  0x96   :  { %v179_v22 = vadd.f32 %v1457_v19, %v178_v21 }
  0xb0   :  { %v231_v24 = vpop.f32.mrf.mxu1 }
  0xb1   :  { %v234_v25 = vadd.f32 %v231_v24, %v179_v22  ;;  %v546_v24 = vld [vmem:[#allocation9 + $0x40] sm:$0xff] }
  0xb3   :  { %1021 = vtanh.f32 %v234_v25  ;;  %v545_v25 = vld [vmem:[#allocation9 + $0x38] sm:$0xff] }
  0xb8   :  { %v181_v40 = vpop.f32.mrf.mxu0 }
  0xb9   :  { %v1022_v28 = vpop.eup %1021  ;;  %v182_v41 = vadd.f32 %v1457_v19, %v181_v40 }
  0xba   :  { %v236_v30 = vmul.f32 %v1022_v28, %v1460_v27  ;;  %v543_v28 = vld [vmem:[#allocation9 + $0x28] sm:$0xff] }
  0xbc   :  { %v237_v31 = vadd.f32 %v236_v30, %v1462_v29  ;;  %v542_v30 = vld [vmem:[#allocation9 + $0x20] sm:$0xff] }
  0xbe   :  { %238 = vrot.lane.b32.xlu0 %v237_v31, %s1221_s3  ;;  %v244_v35 = vmul.f32 0.0, %v237_v31 }
  0xc0   :  { %v184_v55 = vpop.f32.mrf.mxu0 }
  0xc1   :  { %v185_v56 = vadd.f32 %v1457_v19, %v184_v55 }
  0xd2   :  { %v187_v6 = vpop.f32.mrf.mxu0 }
  0xd3   :  { %v188_v7 = vadd.f32 %v1457_v19, %v187_v6 }
 0x130   :  { %v239_v32 = vpop.permute.xlu0 %238 }
 0x131   :  { %v240_v33 = vmul.f32 %v239_v32, %v237_v31  ;;  %v541_v31 = vld [vmem:[#allocation9 + $0x18] sm:$0xff] }
 0x133   :  { %241 = vrot.lane.b32.xlu0 %v240_v33, %s1222_s11  ;;  %v125_v33 = vld [vmem:[%s1768_s0 + $0x20] sm:$0xff] }
 0x134   :  { %1003 = vmatmul.msk.f32.gmra.mxu0 %vm132_vm1, %v125_v33 }
 0x13c   :  { %1004 = vmatmul.msk.f32.gmra.mxu0 %vm132_vm1, %v126_v0 }
 0x1a5   :  { %v242_v36 = vpop.permute.xlu0 %241 }
 0x1a6   :  { %v245_v37 = vadd.f32 %v244_v35, %v242_v36  ;;  %v538_v35 = vld [vmem:[#allocation9] sm:$0xff] }
 0x1a8   :  { %1023 = vtanh.f32 %v245_v37 }
 0x1ae   :  { %v1024_v38 = vpop.eup %1023 }
 0x1af   :  { %v1472_v39 = vmul.f32 %v1024_v38, %v239_v32  ;;  %v540_v32 = vld [vmem:[#allocation9 + $0x10] sm:$0xff] }
 0x1b1   :  { %270 = vmatmul.f32.vlgmr.msra.gmra.mxu2 %v1472_v39 }
 0x1b2   :  { %582 = vmatpush.msra.mxu2 %v553_v13 }
 0x1b4   :  { %583 = vmatpush.msra.mxu2 %v552_v14 }
 0x1b6   :  { %584 = vmatpush.msra.mxu2 %v551_v15 }
 0x1b8   :  { %585 = vmatpush.msra.mxu2 %v550_v16 }
 0x1ba   :  { %586 = vmatpush.msra.mxu2 %v549_v17 }
 0x1bc   :  { %587 = vmatpush.msra.mxu2 %v548_v20 }
 0x1be   :  { %588 = vmatpush.msra.mxu2 %v547_v23 }
 0x1c0   :  { %589 = vmatpush.msra.mxu2 %v546_v24 }
 0x1c2   :  { %590 = vmatpush.msra.mxu2 %v545_v25 }
 0x1c4   :  { %591 = vmatpush.msra.mxu2 %v544_v26 }
 0x1c6   :  { %592 = vmatpush.msra.mxu2 %v543_v28 }
 0x1c8   :  { %593 = vmatpush.msra.mxu2 %v542_v30  ;;  %v127_v30 = vld [vmem:[%s1768_s0 + $0x30] sm:$0xff] }
 0x1c9   :  { %1005 = vmatmul.msk.f32.gmra.mxu0 %vm132_vm1, %v127_v30 }
 0x1ca   :  { %594 = vmatpush.msra.mxu2 %v541_v31  ;;  %v128_v31 = vld [vmem:[%s1768_s0 + $0x38] sm:$0xff] }
 0x1cc   :  { %595 = vmatpush.msra.mxu2 %v540_v32 }
 0x1ce   :  { %596 = vmatpush.msra.mxu2 %v539_v34 }
 0x1d0   :  { %597 = vmatpush.msra.mxu2 %v538_v35 }
 0x1d1   :  { %1006 = vmatmul.msk.f32.gmra.mxu0 %vm132_vm1, %v128_v31 }
 0x234   :  { %v271_v42 = vpop.f32.mrf.mxu2 }
 0x235   :  { %v274_v43 = vadd.f32 %v271_v42, %v182_v41  ;;  %v190_v42 = vpop.f32.mrf.mxu0 }
 0x237   :  { %1025 = vtanh.f32 %v274_v43  ;;  %v191_v43 = vadd.f32 %v1457_v19, %v190_v42 }
 0x23d   :  { %v1026_v44 = vpop.eup %1025 }
 0x23e   :  { %v276_v45 = vmul.f32 %v1026_v44, %v1460_v27 }
 0x240   :  { %v277_v46 = vadd.f32 %v276_v45, %v1462_v29 }
 0x242   :  { %278 = vrot.lane.b32.xlu1 %v277_v46, %s1221_s3  ;;  %v284_v50 = vmul.f32 %v277_v46, %v245_v37 }
 0x2b4   :  { %v279_v47 = vpop.permute.xlu1 %278 }
 0x2b5   :  { %v280_v48 = vmul.f32 %v279_v47, %v277_v46 }
 0x2b7   :  { %281 = vrot.lane.b32.xlu1 %v280_v48, %s1222_s11 }
 0x329   :  { %v282_v51 = vpop.permute.xlu1 %281 }
 0x32a   :  { %v285_v52 = vadd.f32 %v284_v50, %v282_v51  ;;  %v1523_v50 = vld [vmem:[#allocation11 + $0x68] sm:$0xff]  ;;  %v1529_v51 = vld [vmem:[#allocation11 + $0x60] sm:$0xff] }
 0x32c   :  { %1027 = vtanh.f32 %v285_v52 }
 0x332   :  { %v1028_v53 = vpop.eup %1027 }
 0x333   :  { %v1484_v54 = vmul.f32 %v1028_v53, %v279_v47  ;;  %v1541_v53 = vld [vmem:[#allocation11 + $0x50] sm:$0xff] }
 0x335   :  { %311 = vmatmul.f32.vlgmr.msra.gmra.mxu3 %v1484_v54 }
 0x3b8   :  { %v312_v57 = vpop.f32.mrf.mxu3 }
 0x3b9   :  { %v315_v58 = vadd.f32 %v312_v57, %v185_v56  ;;  %v1555_v56 = vld [vmem:[#allocation11 + $0x48] sm:$0xff]  ;;  %v1559_v57 = vld [vmem:[#allocation11 + $0x40] sm:$0xff] }
 0x3bb   :  { %1029 = vtanh.f32 %v315_v58  ;;  %v1564_v58 = vld [vmem:[#allocation11 + $0x38] sm:$0xff] }
 0x3c1   :  { %v1030_v59 = vpop.eup %1029 }
 0x3c2   :  { %v317_v60 = vmul.f32 %v1030_v59, %v1460_v27  ;;  %v1567_v59 = vld [vmem:[#allocation11 + $0x30] sm:$0xff] }
 0x3c4   :  { %v318_v61 = vadd.f32 %v317_v60, %v1462_v29  ;;  %v1573_v60 = vld [vmem:[#allocation11 + $0x28] sm:$0xff] }
 0x3c6   :  { %319 = vrot.lane.b32.xlu2 %v318_v61, %s1221_s3  ;;  %v325_v1 = vmul.f32 %v318_v61, %v285_v52  ;;  %v1535_v52 = vld [vmem:[#allocation11 + $0x58] sm:$0xff] }
 0x420   :  { %v320_v62 = vpop.permute.xlu2 %319 }
 0x421   :  { %v321_v63 = vmul.f32 %v320_v62, %v318_v61  ;;  %v1579_v61 = vld [vmem:[#allocation11 + $0x20] sm:$0xff] }
 0x423   :  { %322 = vrot.lane.b32.xlu2 %v321_v63, %s1222_s11  ;;  %v1591_v63 = vld [vmem:[#allocation11 + $0x10] sm:$0xff] }
 0x47d   :  { %v323_v2 = vpop.permute.xlu2 %322 }
 0x47e   :  { %v326_v3 = vadd.f32 %v325_v1, %v323_v2  ;;  %v1600_v1 = vld [vmem:[#allocation11 + $0x8] sm:$0xff]  ;;  %v1606_v2 = vld [vmem:[#allocation11] sm:$0xff] }
 0x480   :  { %1031 = vtanh.f32 %v326_v3 }
 0x486   :  { %v1032_v4 = vpop.eup %1031 }
 0x487   :  { %v328_v5 = vmul.f32 %v1032_v4, %v320_v62  ;;  %v1589_v62 = vld [vmem:[#allocation11 + $0x18] sm:$0xff] }
 0x489   :  { %352 = vmatmul.f32.vlgmr.msrb.gmra.mxu1 %v328_v5 }
 0x506   :  { %v353_v8 = vpop.f32.mrf.mxu1 }
 0x507   :  { %v356_v9 = vadd.f32 %v353_v8, %v188_v7 }
 0x509   :  { %1033 = vtanh.f32 %v356_v9 }
 0x50f   :  { %v1034_v10 = vpop.eup %1033 }
 0x510   :  { %v358_v11 = vmul.f32 %v1034_v10, %v1460_v27 }
 0x512   :  { %v359_v12 = vadd.f32 %v358_v11, %v1462_v29  ;;  %v1661_v11 = vld [vmem:[%s1774_s6] ss:$0 sm:$0xff] }
 0x514   :  { %360 = vrot.lane.b32.xlu0 %v359_v12, %s1221_s3  ;;  %v366_v36 = vmul.f32 %v359_v12, %v326_v3 }
 0x586   :  { %v361_v21 = vpop.permute.xlu0 %360 }
 0x587   :  { %v362_v22 = vmul.f32 %v361_v21, %v359_v12 }
 0x589   :  { %363 = vrot.lane.b32.xlu1 %v362_v22, %s1222_s11 }
 0x5fb   :  { %v364_v37 = vpop.permute.xlu1 %363 }
 0x5fc   :  { %v1505_v38 = vadd.f32 %v366_v36, %v364_v37 }
 0x5fe   :  { %1035 = vtanh.f32 %v1505_v38 }
 0x604   :  { %v1036_v40 = vpop.eup %1035 }
 0x605   :  { %v369_v41 = vmul.f32 %v1036_v40, %v361_v21 }
 0x607   :  { %393 = vmatmul.f32.vlgmr.msrb.gmra.mxu2 %v369_v41 }
 0x60f   :  { %598 = vmatmul.f32.vlgmr.msra.gmra.mxu2 %v1472_v39  ;;  %v1517_v39 = vld [vmem:[#allocation11 + $0x78] sm:$0xff] }
 0x610   :  { %635 = vmatpush.msra.mxu3 %v1517_v39  ;;  %673 = vmatpush.msra.mxu0 %v1517_v39 }
 0x611   :  { %711 = vmatpush.msrb.mxu1 %v1517_v39  ;;  %863 = vmatpush.msrb.mxu2 %v1517_v39 }
 0x612   :  { %636 = vmatpush.msra.mxu3 %v1519_v49  ;;  %674 = vmatpush.msra.mxu0 %v1519_v49 }
 0x613   :  { %712 = vmatpush.msrb.mxu1 %v1519_v49  ;;  %864 = vmatpush.msrb.mxu2 %v1519_v49 }
 0x614   :  { %637 = vmatpush.msra.mxu3 %v1523_v50  ;;  %675 = vmatpush.msra.mxu0 %v1523_v50 }
 0x615   :  { %713 = vmatpush.msrb.mxu1 %v1523_v50  ;;  %865 = vmatpush.msrb.mxu2 %v1523_v50 }
 0x616   :  { %638 = vmatpush.msra.mxu3 %v1529_v51  ;;  %676 = vmatpush.msra.mxu0 %v1529_v51 }
 0x617   :  { %601 = vmatmul.f32.gmra.mxu2 %v1484_v54  ;;  %714 = vmatpush.msrb.mxu1 %v1529_v51 }
 0x618   :  { %866 = vmatpush.msrb.mxu2 %v1529_v51  ;;  %639 = vmatpush.msra.mxu3 %v1535_v52 }
 0x619   :  { %677 = vmatpush.msra.mxu0 %v1535_v52  ;;  %715 = vmatpush.msrb.mxu1 %v1535_v52 }
 0x61a   :  { %867 = vmatpush.msrb.mxu2 %v1535_v52  ;;  %640 = vmatpush.msra.mxu3 %v1541_v53 }
 0x61b   :  { %678 = vmatpush.msra.mxu0 %v1541_v53  ;;  %716 = vmatpush.msrb.mxu1 %v1541_v53 }
 0x61c   :  { %868 = vmatpush.msrb.mxu2 %v1541_v53  ;;  %641 = vmatpush.msra.mxu3 %v1555_v56 }
 0x61d   :  { %679 = vmatpush.msra.mxu0 %v1555_v56  ;;  %717 = vmatpush.msrb.mxu1 %v1555_v56 }
 0x61e   :  { %869 = vmatpush.msrb.mxu2 %v1555_v56  ;;  %642 = vmatpush.msra.mxu3 %v1559_v57 }
 0x61f   :  { %604 = vmatmul.f32.gmra.mxu2 %v328_v5  ;;  %680 = vmatpush.msra.mxu0 %v1559_v57 }
 0x620   :  { %718 = vmatpush.msrb.mxu1 %v1559_v57  ;;  %870 = vmatpush.msrb.mxu2 %v1559_v57 }
 0x621   :  { %643 = vmatpush.msra.mxu3 %v1564_v58  ;;  %681 = vmatpush.msra.mxu0 %v1564_v58 }
 0x622   :  { %719 = vmatpush.msrb.mxu1 %v1564_v58  ;;  %871 = vmatpush.msrb.mxu2 %v1564_v58 }
 0x623   :  { %644 = vmatpush.msra.mxu3 %v1567_v59  ;;  %682 = vmatpush.msra.mxu0 %v1567_v59 }
 0x624   :  { %720 = vmatpush.msrb.mxu1 %v1567_v59  ;;  %872 = vmatpush.msrb.mxu2 %v1567_v59 }
 0x625   :  { %645 = vmatpush.msra.mxu3 %v1573_v60  ;;  %683 = vmatpush.msra.mxu0 %v1573_v60 }
 0x626   :  { %721 = vmatpush.msrb.mxu1 %v1573_v60  ;;  %873 = vmatpush.msrb.mxu2 %v1573_v60 }
 0x627   :  { %607 = vmatmul.f32.gmra.mxu2 %v369_v41  ;;  %646 = vmatpush.msra.mxu3 %v1579_v61 }
 0x628   :  { %684 = vmatpush.msra.mxu0 %v1579_v61  ;;  %722 = vmatpush.msrb.mxu1 %v1579_v61 }
 0x629   :  { %874 = vmatpush.msrb.mxu2 %v1579_v61  ;;  %647 = vmatpush.msra.mxu3 %v1589_v62 }
 0x62a   :  { %685 = vmatpush.msra.mxu0 %v1589_v62  ;;  %723 = vmatpush.msrb.mxu1 %v1589_v62 }
 0x62b   :  { %648 = vmatpush.msra.mxu3 %v1591_v63  ;;  %875 = vmatpush.msrb.mxu2 %v1589_v62 }
 0x62c   :  { %686 = vmatpush.msra.mxu0 %v1591_v63  ;;  %724 = vmatpush.msrb.mxu1 %v1591_v63 }
 0x62d   :  { %649 = vmatpush.msra.mxu3 %v1600_v1  ;;  %876 = vmatpush.msrb.mxu2 %v1591_v63 }
 0x62e   :  { %687 = vmatpush.msra.mxu0 %v1600_v1  ;;  %725 = vmatpush.msrb.mxu1 %v1600_v1 }
 0x62f   :  { %650 = vmatpush.msra.mxu3 %v1606_v2  ;;  %877 = vmatpush.msrb.mxu2 %v1600_v1 }
 0x630   :  { %688 = vmatpush.msra.mxu0 %v1606_v2  ;;  %726 = vmatpush.msrb.mxu1 %v1606_v2 }
 0x631   :  { %878 = vmatpush.msrb.mxu2 %v1606_v2 }
 0x68a   :  { %v394_v44 = vpop.f32.mrf.mxu2 }
 0x68b   :  { %v397_v45 = vadd.f32 %v394_v44, %v191_v43 }
 0x68d   :  { %1037 = vtanh.f32 %v397_v45 }
 0x692   :  { %v599_v12 = vpop.f32.mrf.mxu2 }
 0x693   :  { %v1038_v46 = vpop.eup %1037  ;;  %v600_v13 = vadd.f32 %v1661_v11, %v599_v12 }
 0x694   :  { %v399_v47 = vmul.f32 %v1038_v46, %v1460_v27 }
 0x696   :  { %v1513_v48 = vadd.f32 %v399_v47, %v1462_v29 }
 0x698   :  { %401 = vrot.lane.b32.xlu2 %v1513_v48, %s1221_s3  ;;  %v407_v3 = vmul.f32 %v1513_v48, %v1505_v38 }
 0x6f2   :  { %v402_v54 = vpop.permute.xlu2 %401 }
 0x6f3   :  { %v403_v55 = vmul.f32 %v402_v54, %v1513_v48  ;;  %v602_v48 = vpop.f32.mrf.mxu2 }
 0x6f5   :  { %404 = vrot.lane.b32.xlu0 %v403_v55, %s1222_s11 }
 0x767   :  { %v405_v4 = vpop.permute.xlu0 %404 }
 0x768   :  { %v1621_v5 = vadd.f32 %v407_v3, %v405_v4 }
 0x76a   :  { %1039 = vtanh.f32 %v1621_v5 }
 0x770   :  { %v1040_v6 = vpop.eup %1039 }
 0x771   :  { %v410_v7 = vmul.f32 %v1040_v6, %v402_v54  ;;  %v603_v54 = vadd.f32 %v1661_v11, %v602_v48 }
 0x773   :  { %434 = vmatmul.f32.vlgmr.msrb.gmra.mxu3 %v410_v7  ;;  %610 = vmatmul.f32.gmra.mxu2 %v410_v7 }
 0x774   :  { %749 = vmatpush.msrb.mxu3 %v1517_v39 }
 0x776   :  { %750 = vmatpush.msrb.mxu3 %v1519_v49 }
 0x778   :  { %751 = vmatpush.msrb.mxu3 %v1523_v50 }
 0x77a   :  { %752 = vmatpush.msrb.mxu3 %v1529_v51 }
 0x77b   :  { %651 = vmatmul.f32.vlgmr.msra.gmra.mxu3 %v1219_v18  ;;  %v193_v18 = vpop.f32.mrf.mxu0 }
 0x77c   :  { %753 = vmatpush.msrb.mxu3 %v1535_v52  ;;  %v194_v8 = vadd.f32 %v1457_v19, %v193_v18 }
 0x77e   :  { %754 = vmatpush.msrb.mxu3 %v1541_v53 }
 0x780   :  { %755 = vmatpush.msrb.mxu3 %v1555_v56 }
 0x782   :  { %756 = vmatpush.msrb.mxu3 %v1559_v57 }
 0x783   :  { %v196_v43 = vpop.f32.mrf.mxu0 }
 0x784   :  { %757 = vmatpush.msrb.mxu3 %v1564_v58  ;;  %v197_v45 = vadd.f32 %v1457_v19, %v196_v43 }
 0x786   :  { %758 = vmatpush.msrb.mxu3 %v1567_v59 }
 0x788   :  { %759 = vmatpush.msrb.mxu3 %v1573_v60 }
 0x78a   :  { %760 = vmatpush.msrb.mxu3 %v1579_v61 }
 0x78b   :  { %v199_v44 = vpop.f32.mrf.mxu0 }
 0x78c   :  { %761 = vmatpush.msrb.mxu3 %v1589_v62 }
 0x78e   :  { %762 = vmatpush.msrb.mxu3 %v1591_v63 }
 0x790   :  { %763 = vmatpush.msrb.mxu3 %v1600_v1 }
 0x792   :  { %764 = vmatpush.msrb.mxu3 %v1606_v2 }
 0x794   :  { %901 = vmatpush.msra.mxu3 %v1517_v39 }
 0x796   :  { %902 = vmatpush.msra.mxu3 %v1519_v49 }
 0x798   :  { %903 = vmatpush.msra.mxu3 %v1523_v50 }
 0x79a   :  { %904 = vmatpush.msra.mxu3 %v1529_v51 }
 0x79c   :  { %905 = vmatpush.msra.mxu3 %v1535_v52 }
 0x79e   :  { %906 = vmatpush.msra.mxu3 %v1541_v53 }
 0x7a0   :  { %907 = vmatpush.msra.mxu3 %v1555_v56 }
 0x7a2   :  { %908 = vmatpush.msra.mxu3 %v1559_v57 }
 0x7a4   :  { %909 = vmatpush.msra.mxu3 %v1564_v58 }
 0x7a6   :  { %910 = vmatpush.msra.mxu3 %v1567_v59 }
 0x7a8   :  { %911 = vmatpush.msra.mxu3 %v1573_v60 }
 0x7aa   :  { %912 = vmatpush.msra.mxu3 %v1579_v61 }
 0x7ac   :  { %913 = vmatpush.msra.mxu3 %v1589_v62 }
 0x7ae   :  { %914 = vmatpush.msra.mxu3 %v1591_v63 }
 0x7b0   :  { %915 = vmatpush.msra.mxu3 %v1600_v1 }
 0x7b2   :  { %916 = vmatpush.msra.mxu3 %v1606_v2 }
 0x7f6   :  { %v435_v9 = vpop.f32.mrf.mxu3 }
 0x7f7   :  { %v438_v10 = vadd.f32 %v435_v9, %v194_v8 }
 0x7f9   :  { %1041 = vtanh.f32 %v438_v10 }
 0x7fe   :  { %v652_v14 = vpop.f32.mrf.mxu3 }
 0x7ff   :  { %v1042_v15 = vpop.eup %1041  ;;  %v655_v16 = vadd.f32 %v652_v14, %v600_v13 }
 0x800   :  { %v440_v17 = vmul.f32 %v1042_v15, %v1460_v27 }
 0x801   :  { %1043 = vtanh.f32 %v655_v16 }
 0x802   :  { %v441_v20 = vadd.f32 %v440_v17, %v1462_v29 }
 0x804   :  { %442 = vrot.lane.b32.xlu1 %v441_v20, %s1221_s3  ;;  %v448_v32 = vmul.f32 %v441_v20, %v1621_v5 }
 0x807   :  { %v1044_v21 = vpop.eup %1043 }
 0x808   :  { %v657_v22 = vmul.f32 %v1044_v21, %v1460_v27 }
 0x80a   :  { %v658_v23 = vadd.f32 %v657_v22, %v1462_v29 }
 0x80c   :  { %659 = vrot.lane.b32.xlu2 %v658_v23, %s1221_s3  ;;  %v665_v36 = vmul.f32 0.0, %v658_v23 }
 0x866   :  { %v660_v24 = vpop.permute.xlu2 %659 }
 0x867   :  { %v661_v25 = vmul.f32 %v660_v24, %v658_v23 }
 0x869   :  { %662 = vrot.lane.b32.xlu1 %v661_v25, %s1222_s11 }
 0x876   :  { %v443_v26 = vpop.permute.xlu1 %442 }
 0x877   :  { %v444_v28 = vmul.f32 %v443_v26, %v441_v20 }
 0x879   :  { %445 = vrot.lane.b32.xlu0 %v444_v28, %s1222_s11 }
 0x8db   :  { %v663_v35 = vpop.permute.xlu1 %662 }
 0x8dc   :  { %v666_v37 = vadd.f32 %v665_v36, %v663_v35 }
 0x8eb   :  { %v446_v33 = vpop.permute.xlu0 %445 }
 0x8ec   :  { %v449_v34 = vadd.f32 %v448_v32, %v446_v33 }
 0x8ee   :  { %1045 = vtanh.f32 %v449_v34 }
 0x8ef   :  { %1047 = vtanh.f32 %v666_v37 }
 0x8f4   :  { %v1046_v38 = vpop.eup %1045 }
 0x8f5   :  { %v451_v40 = vmul.f32 %v1046_v38, %v443_v26  ;;  %v1048_v41 = vpop.eup %1047 }
 0x8f6   :  { %v668_v42 = vmul.f32 %v1048_v41, %v660_v24 }
 0x8f7   :  { %475 = vmatmul.f32.vlgmr.msrb.gmra.mxu0 %v451_v40  ;;  %613 = vmatmul.f32.gmra.mxu2 %v451_v40 }
 0x8f8   :  { %787 = vmatpush.msrb.mxu0 %v1517_v39 }
 0x8fa   :  { %788 = vmatpush.msrb.mxu0 %v1519_v49 }
 0x8fc   :  { %789 = vmatpush.msrb.mxu0 %v1523_v50 }
 0x8fe   :  { %790 = vmatpush.msrb.mxu0 %v1529_v51 }
 0x8ff   :  { %689 = vmatmul.f32.vlgmr.msra.gmra.mxu0 %v668_v42 }
 0x900   :  { %791 = vmatpush.msrb.mxu0 %v1535_v52 }
 0x902   :  { %792 = vmatpush.msrb.mxu0 %v1541_v53 }
 0x904   :  { %793 = vmatpush.msrb.mxu0 %v1555_v56 }
 0x906   :  { %794 = vmatpush.msrb.mxu0 %v1559_v57 }
 0x908   :  { %795 = vmatpush.msrb.mxu0 %v1564_v58 }
 0x90a   :  { %796 = vmatpush.msrb.mxu0 %v1567_v59 }
 0x90c   :  { %797 = vmatpush.msrb.mxu0 %v1573_v60 }
 0x90e   :  { %798 = vmatpush.msrb.mxu0 %v1579_v61 }
 0x910   :  { %799 = vmatpush.msrb.mxu0 %v1589_v62 }
 0x912   :  { %800 = vmatpush.msrb.mxu0 %v1591_v63 }
 0x914   :  { %801 = vmatpush.msrb.mxu0 %v1600_v1 }
 0x916   :  { %802 = vmatpush.msrb.mxu0 %v1606_v2 }
 0x974   :  { %v476_v46 = vpop.f32.mrf.mxu0 }
 0x975   :  { %v479_v47 = vadd.f32 %v476_v46, %v197_v45 }
 0x977   :  { %1049 = vtanh.f32 %v479_v47 }
 0x97c   :  { %v690_v55 = vpop.f32.mrf.mxu0 }
 0x97d   :  { %v1050_v0 = vpop.eup %1049  ;;  %v693_v3 = vadd.f32 %v690_v55, %v603_v54 }
 0x97e   :  { %v481_v4 = vmul.f32 %v1050_v0, %v1460_v27 }
 0x97f   :  { %1051 = vtanh.f32 %v693_v3 }
 0x980   :  { %v482_v5 = vadd.f32 %v481_v4, %v1462_v29 }
 0x982   :  { %483 = vrot.lane.b32.xlu2 %v482_v5, %s1221_s3  ;;  %v489_v13 = vmul.f32 %v482_v5, %v449_v34 }
 0x985   :  { %v1052_v6 = vpop.eup %1051 }
 0x986   :  { %v695_v7 = vmul.f32 %v1052_v6, %v1460_v27 }
 0x988   :  { %v696_v18 = vadd.f32 %v695_v7, %v1462_v29 }
 0x98a   :  { %697 = vrot.lane.b32.xlu0 %v696_v18, %s1221_s3  ;;  %v703_v16 = vmul.f32 %v696_v18, %v666_v37 }
 0x9dc   :  { %v484_v8 = vpop.permute.xlu2 %483 }
 0x9dd   :  { %v485_v9 = vmul.f32 %v484_v8, %v482_v5 }
 0x9df   :  { %486 = vrot.lane.b32.xlu1 %v485_v9, %s1222_s11 }
 0x9fc   :  { %v698_v10 = vpop.permute.xlu0 %697 }
 0x9fd   :  { %v699_v12 = vmul.f32 %v698_v10, %v696_v18 }
 0x9ff   :  { %700 = vrot.lane.b32.xlu2 %v699_v12, %s1222_s11 }
 0xa51   :  { %v487_v14 = vpop.permute.xlu1 %486 }
 0xa52   :  { %v1707_v15 = vadd.f32 %v489_v13, %v487_v14 }
 0xa54   :  { %1053 = vtanh.f32 %v1707_v15 }
 0xa59   :  { %v701_v17 = vpop.permute.xlu2 %700 }
 0xa5a   :  { %v1054_v20 = vpop.eup %1053  ;;  %v704_v21 = vadd.f32 %v703_v16, %v701_v17 }
 0xa5b   :  { %v492_v22 = vmul.f32 %v1054_v20, %v484_v8 }
 0xa5c   :  { %1055 = vtanh.f32 %v704_v21 }
 0xa5d   :  { %516 = vmatmul.f32.vlgmr.msra.gmra.mxu1 %v492_v22  ;;  %616 = vmatmul.f32.gmra.mxu2 %v492_v22 }
 0xa5e   :  { %825 = vmatpush.msra.mxu1 %v1517_v39  ;;  %v200_v39 = vadd.f32 %v1457_v19, %v199_v44 }
 0xa60   :  { %826 = vmatpush.msra.mxu1 %v1519_v49 }
 0xa62   :  { %v1056_v23 = vpop.eup %1055  ;;  %827 = vmatpush.msra.mxu1 %v1523_v50 }
 0xa63   :  { %v706_v24 = vmul.f32 %v1056_v23, %v698_v10 }
 0xa64   :  { %828 = vmatpush.msra.mxu1 %v1529_v51  ;;  %v605_v51 = vpop.f32.mrf.mxu2 }
 0xa65   :  { %727 = vmatmul.f32.vlgmr.msrb.gmra.mxu1 %v706_v24 }
 0xa66   :  { %829 = vmatpush.msra.mxu1 %v1535_v52  ;;  %v606_v52 = vadd.f32 %v1661_v11, %v605_v51 }
 0xa68   :  { %830 = vmatpush.msra.mxu1 %v1541_v53 }
 0xa6a   :  { %831 = vmatpush.msra.mxu1 %v1555_v56 }
 0xa6c   :  { %832 = vmatpush.msra.mxu1 %v1559_v57  ;;  %v608_v25 = vpop.f32.mrf.mxu2 }
 0xa6d   :  { %v609_v26 = vadd.f32 %v1661_v11, %v608_v25 }
 0xa6e   :  { %833 = vmatpush.msra.mxu1 %v1564_v58 }
 0xa70   :  { %834 = vmatpush.msra.mxu1 %v1567_v59 }
 0xa72   :  { %835 = vmatpush.msra.mxu1 %v1573_v60 }
 0xa74   :  { %836 = vmatpush.msra.mxu1 %v1579_v61  ;;  %v611_v45 = vpop.f32.mrf.mxu2 }
 0xa75   :  { %v612_v46 = vadd.f32 %v1661_v11, %v611_v45  ;;  %v947_v45 = vld [vmem:[#allocation12 + $0x48] sm:$0xff] }
 0xa76   :  { %837 = vmatpush.msra.mxu1 %v1589_v62 }
 0xa78   :  { %838 = vmatpush.msra.mxu1 %v1591_v63 }
 0xa7a   :  { %839 = vmatpush.msra.mxu1 %v1600_v1 }
 0xa7c   :  { %840 = vmatpush.msra.mxu1 %v1606_v2  ;;  %v614_v20 = vpop.f32.mrf.mxu2 }
 0xada   :  { %v517_v49 = vpop.f32.mrf.mxu1 }
 0xadb   :  { %v520_v50 = vadd.f32 %v517_v49, %v200_v39 }
 0xae2   :  { %v728_v53 = vpop.f32.mrf.mxu1 }
 0xae3   :  { %v731_v56 = vadd.f32 %v728_v53, %v606_v52 }
 0xae5   :  { %1057 = vtanh.f32 %v731_v56 }
 0xaeb   :  { %v1058_v57 = vpop.eup %1057 }
 0xaec   :  { %v733_v58 = vmul.f32 %v1058_v57, %v1460_v27 }
 0xaee   :  { %v734_v59 = vadd.f32 %v733_v58, %v1462_v29  ;;  %v617_v58 = vpop.f32.mrf.mxu2 }
 0xaf0   :  { %735 = vrot.lane.b32.xlu0 %v734_v59, %s1221_s3  ;;  %v741_v19 = vmul.f32 %v734_v59, %v704_v21  ;;  %v615_v21 = vadd.f32 %v1661_v11, %v614_v20 }
 0xb62   :  { %v736_v60 = vpop.permute.xlu0 %735 }
 0xb63   :  { %v737_v61 = vmul.f32 %v736_v60, %v734_v59 }
 0xb65   :  { %738 = vrot.lane.b32.xlu1 %v737_v61, %s1222_s11 }
 0xbd7   :  { %v739_v62 = vpop.permute.xlu1 %738 }
 0xbd8   :  { %v742_v63 = vadd.f32 %v741_v19, %v739_v62 }
 0xbda   :  { %1059 = vtanh.f32 %v742_v63 }
 0xbe0   :  { %v1060_v1 = vpop.eup %1059 }
 0xbe1   :  { %v744_v2 = vmul.f32 %v1060_v1, %v736_v60  ;;  %v618_v60 = vadd.f32 %v1661_v11, %v617_v58 }
 0xbe3   :  { %765 = vmatmul.f32.vlgmr.msrb.gmra.mxu3 %v744_v2 }
 0xc66   :  { %v766_v28 = vpop.f32.mrf.mxu3 }
 0xc67   :  { %v769_v30 = vadd.f32 %v766_v28, %v609_v26 }
 0xc69   :  { %1061 = vtanh.f32 %v769_v30 }
 0xc6a   :  { %1063 = vtanh.f32 %v520_v50 }
 0xc6f   :  { %v1062_v31 = vpop.eup %1061 }
 0xc70   :  { %v771_v32 = vmul.f32 %v1062_v31, %v1460_v27  ;;  %v1064_v36 = vpop.eup %1063 }
 0xc71   :  { %v522_v37 = vmul.f32 %v1064_v36, %v1460_v27 }
 0xc72   :  { %v772_v33 = vadd.f32 %v771_v32, %v1462_v29 }
 0xc73   :  { %v523_v38 = vadd.f32 %v522_v37, %v1462_v29 }
 0xc74   :  { %773 = vrot.lane.b32.xlu2 %v772_v33, %s1221_s3  ;;  %v779_v40 = vmul.f32 %v772_v33, %v742_v63 }
 0xc75   :  { %v530_v9 = vmul.f32 %v523_v38, %v1707_v15 }
 0xcce   :  { %v774_v34 = vpop.permute.xlu2 %773 }
 0xccf   :  { %v775_v35 = vmul.f32 %v774_v34, %v772_v33 }
 0xcd1   :  { %776 = vrot.lane.b32.xlu0 %v775_v35, %s1222_s11 }
 0xcd9   :  { %524 = vrot.lane.b32.xlu0 %v523_v38, %s1221_s3 }
 0xd43   :  { %v777_v41 = vpop.permute.xlu0 %776 }
 0xd44   :  { %v780_v42 = vadd.f32 %v779_v40, %v777_v41  ;;  %v953_v40 = vld [vmem:[#allocation12 + $0x78] sm:$0xff]  ;;  %v952_v41 = vld [vmem:[#allocation12 + $0x70] sm:$0xff] }
 0xd45   :  { %958 = vmatpush.msra.mxu0 %v953_v40 }
 0xd46   :  { %1065 = vtanh.f32 %v780_v42 }
 0xd47   :  { %959 = vmatpush.msra.mxu0 %v952_v41 }
 0xd4b   :  { %v525_v5 = vpop.permute.xlu0 %524 }
 0xd4c   :  { %v1066_v43 = vpop.eup %1065  ;;  %v526_v6 = vmul.f32 %v525_v5, %v523_v38 }
 0xd4d   :  { %v782_v44 = vmul.f32 %v1066_v43, %v774_v34  ;;  %v950_v43 = vld [vmem:[#allocation12 + $0x60] sm:$0xff] }
 0xd4f   :  { %803 = vmatmul.f32.vlgmr.msrb.gmra.mxu0 %v782_v44  ;;  %v949_v44 = vld [vmem:[#allocation12 + $0x58] sm:$0xff] }
 0xdcc   :  { %v804_v47 = vpop.f32.mrf.mxu0 }
 0xdcd   :  { %v807_v48 = vadd.f32 %v804_v47, %v612_v46  ;;  %v946_v46 = vld [vmem:[#allocation12 + $0x40] sm:$0xff] }
 0xdcf   :  { %1067 = vtanh.f32 %v807_v48 }
 0xdd5   :  { %v1068_v54 = vpop.eup %1067 }
 0xdd6   :  { %v809_v55 = vmul.f32 %v1068_v54, %v1460_v27  ;;  %v943_v54 = vld [vmem:[#allocation12 + $0x28] sm:$0xff] }
 0xdd8   :  { %v810_v0 = vadd.f32 %v809_v55, %v1462_v29  ;;  %v942_v55 = vld [vmem:[#allocation12 + $0x20] sm:$0xff] }
 0xdda   :  { %811 = vrot.lane.b32.xlu1 %v810_v0, %s1221_s3  ;;  %v817_v7 = vmul.f32 %v810_v0, %v780_v42  ;;  %v951_v42 = vld [vmem:[#allocation12 + $0x68] sm:$0xff] }
 0xddb   :  { %960 = vmatpush.msra.mxu0 %v951_v42 }
 0xddd   :  { %961 = vmatpush.msra.mxu0 %v950_v43 }
 0xddf   :  { %962 = vmatpush.msra.mxu0 %v949_v44 }
 0xe4c   :  { %v812_v3 = vpop.permute.xlu1 %811 }
 0xe4d   :  { %v813_v4 = vmul.f32 %v812_v3, %v810_v0  ;;  %v941_v0 = vld [vmem:[#allocation12 + $0x18] sm:$0xff] }
 0xe4f   :  { %814 = vrot.lane.b32.xlu2 %v813_v4, %s1222_s11  ;;  %v939_v4 = vld [vmem:[#allocation12 + $0x8] sm:$0xff] }
 0xe57   :  { %527 = vrot.lane.b32.xlu2 %v526_v6, %s1222_s11 }
 0xea9   :  { %v815_v18 = vpop.permute.xlu2 %814 }
 0xeaa   :  { %v818_v8 = vadd.f32 %v817_v7, %v815_v18 }
 0xeac   :  { %1069 = vtanh.f32 %v818_v8 }
 0xeb1   :  { %v528_v10 = vpop.permute.xlu2 %527 }
 0xeb2   :  { %v1070_v12 = vpop.eup %1069  ;;  %v531_v13 = vadd.f32 %v530_v9, %v528_v10  ;;  %v1020_v10 = vld [vmem:[%s1776_s8] ss:$0 sm:$0xff] }
 0xeb3   :  { %v820_v14 = vmul.f32 %v1070_v12, %v812_v3  ;;  %v940_v3 = vld [vmem:[#allocation12 + $0x10] sm:$0xff] }
 0xeb4   :  { %1071 = vtanh.f32 %v531_v13 }
 0xeb5   :  { %841 = vmatmul.f32.vlgmr.msra.gmra.mxu1 %v820_v14 }
 0xeba   :  { %v1072_v16 = vpop.eup %1071 }
 0xebb   :  { %v533_v17 = vmul.f32 %v1072_v16, %v525_v5  ;;  %v938_v5 = vld [vmem:[#allocation12] sm:$0xff] }
 0xebd   :  { %619 = vmatmul.f32.gmra.mxu2 %v533_v17 }
 0xf32   :  { %v842_v22 = vpop.f32.mrf.mxu1 }
 0xf33   :  { %v845_v23 = vadd.f32 %v842_v22, %v615_v21 }
 0xf35   :  { %1073 = vtanh.f32 %v845_v23 }
 0xf3b   :  { %v1074_v24 = vpop.eup %1073 }
 0xf3c   :  { %v847_v39 = vmul.f32 %v1074_v24, %v1460_v27 }
 0xf3e   :  { %v848_v15 = vadd.f32 %v847_v39, %v1462_v29 }
 0xf40   :  { %849 = vrot.lane.b32.xlu1 %v848_v15, %s1221_s3  ;;  %v855_v51 = vmul.f32 %v848_v15, %v818_v8  ;;  %v620_v59 = vpop.f32.mrf.mxu2 }
 0xf41   :  { %v621_v33 = vadd.f32 %v1661_v11, %v620_v59  ;;  %v948_v11 = vld [vmem:[#allocation12 + $0x50] sm:$0xff] }
 0xf42   :  { %963 = vmatpush.msra.mxu0 %v948_v11 }
 0xf44   :  { %964 = vmatpush.msra.mxu0 %v947_v45 }
 0xf46   :  { %965 = vmatpush.msra.mxu0 %v946_v46 }
 0xfb2   :  { %v850_v49 = vpop.permute.xlu1 %849 }
 0xfb3   :  { %v851_v50 = vmul.f32 %v850_v49, %v848_v15 }
 0xfb5   :  { %852 = vrot.lane.b32.xlu0 %v851_v50, %s1222_s11 }
0x1027   :  { %v853_v52 = vpop.permute.xlu0 %852 }
0x1028   :  { %v856_v53 = vadd.f32 %v855_v51, %v853_v52 }
0x102a   :  { %1075 = vtanh.f32 %v856_v53 }
0x1030   :  { %v1076_v56 = vpop.eup %1075 }
0x1031   :  { %v858_v57 = vmul.f32 %v1076_v56, %v850_v49 }
0x1033   :  { %879 = vmatmul.f32.vlgmr.msrb.gmra.mxu2 %v858_v57 }
0x10b6   :  { %v880_v61 = vpop.f32.mrf.mxu2 }
0x10b7   :  { %v883_v19 = vadd.f32 %v880_v61, %v618_v60 }
0x10b9   :  { %1077 = vtanh.f32 %v883_v19 }
0x10bf   :  { %v1078_v62 = vpop.eup %1077 }
0x10c0   :  { %v885_v63 = vmul.f32 %v1078_v62, %v1460_v27 }
0x10c2   :  { %v886_v1 = vadd.f32 %v885_v63, %v1462_v29 }
0x10c4   :  { %887 = vrot.lane.b32.xlu1 %v886_v1, %s1221_s3  ;;  %v893_v26 = vmul.f32 %v886_v1, %v856_v53 }
0x1136   :  { %v888_v2 = vpop.permute.xlu1 %887 }
0x1137   :  { %v889_v25 = vmul.f32 %v888_v2, %v886_v1 }
0x1139   :  { %890 = vrot.lane.b32.xlu2 %v889_v25, %s1222_s11 }
0x1193   :  { %v891_v28 = vpop.permute.xlu2 %890 }
0x1194   :  { %v894_v30 = vadd.f32 %v893_v26, %v891_v28 }
0x1196   :  { %1079 = vtanh.f32 %v894_v30 }
0x119c   :  { %v1080_v31 = vpop.eup %1079 }
0x119d   :  { %v896_v32 = vmul.f32 %v1080_v31, %v888_v2 }
0x119f   :  { %917 = vmatmul.f32.vlgmr.msra.gmra.mxu3 %v896_v32 }
0x1222   :  { %v918_v34 = vpop.f32.mrf.mxu3 }
0x1223   :  { %v921_v35 = vadd.f32 %v918_v34, %v621_v33 }
0x1225   :  { %1081 = vtanh.f32 %v921_v35 }
0x122b   :  { %v1082_v36 = vpop.eup %1081 }
0x122c   :  { %v923_v37 = vmul.f32 %v1082_v36, %v1460_v27  ;;  %v945_v27 = vld [vmem:[#allocation12 + $0x38] sm:$0xff] }
0x122d   :  { %966 = vmatpush.msra.mxu0 %v945_v27 }
0x122e   :  { %v924_v38 = vadd.f32 %v923_v37, %v1462_v29  ;;  %v944_v29 = vld [vmem:[#allocation12 + $0x30] sm:$0xff] }
0x122f   :  { %967 = vmatpush.msra.mxu0 %v944_v29 }
0x1230   :  { %925 = vrot.lane.b32.xlu0 %v924_v38, %s1221_s3  ;;  %v931_v6 = vmul.f32 %v924_v38, %v894_v30 }
0x1231   :  { %968 = vmatpush.msra.mxu0 %v943_v54 }
0x1233   :  { %969 = vmatpush.msra.mxu0 %v942_v55 }
0x1235   :  { %970 = vmatpush.msra.mxu0 %v941_v0 }
0x1237   :  { %971 = vmatpush.msra.mxu0 %v940_v3 }
0x1239   :  { %972 = vmatpush.msra.mxu0 %v939_v4 }
0x123b   :  { %973 = vmatpush.msra.mxu0 %v938_v5 }
0x12a2   :  { %v926_v47 = vpop.permute.xlu0 %925 }
0x12a3   :  { %v927_v48 = vmul.f32 %v926_v47, %v924_v38 }
0x12a5   :  { %928 = vrot.lane.b32.xlu1 %v927_v48, %s1222_s11 }
0x1317   :  { %v929_v7 = vpop.permute.xlu1 %928 }
0x1318   :  { %v932_v18 = vadd.f32 %v931_v6, %v929_v7 }
0x131a   :  { %1083 = vtanh.f32 %v932_v18 }
0x1320   :  { %v1084_v8 = vpop.eup %1083 }
0x1321   :  { %v934_v9 = vmul.f32 %v1084_v8, %v926_v47 }
0x1323   :  { %974 = vmatmul.f32.vlgmr.msra.gmra.mxu0 %v934_v9 }
0x13a0   :  { %v975_v12 = vpop.f32.mrf.mxu0 }
0x13a1   :  { %v976_v13 = vadd.f32 %v1020_v10, %v975_v12 }
0x13a3   :  { %978 = vst [vmem:[#allocation14] sm:$0xff] %v976_v13 }
0x13a4   :  { %989 = dma.vmem_to_hbm [thread:$0]  %s985_s2, 128, %s987_s7, [#allocation8]  }
0x13a5   :  { %1211 = dma.done.wait [#allocation8], 128  }
0x13a6   :  { %1212 = vsyncadd [#allocation8], 4294967168 }
0x13a7   :  { %994 = vsyncpa [#allocation7], 1 }
0x13a8   :  { %995 = vsyncpa [#allocation10], 1 }
0x13a9   :  { %996 = vsyncpa [#allocation13], 1 }
0x13aa   :  { %997 = vsyncpa [#allocation8], 1 }

</bundles_post_ra>
